<compile_context>
chip_gen: v5e
topology: v5e:2x2
jax: 0.10.0
libtpu: 0.0.40
codegen_flags: <defaults>
</compile_context>

<pallas_src>
import functools

import jax
import jax.numpy as jnp
from jax.experimental import pallas as pl
from jax.experimental.pallas import tpu as pltpu


def _round_up(x, m):
    return ((x + m - 1) // m) * m


def _largest_divisor_leq(n, cap):
    for c in range(min(n, cap), 0, -1):
        if n % c == 0:
            return c
    return 1


def _rnn_chunk_kernel(tokens_ref, emb_hbm, w_ih_ref, w_hh_ref, bias_ref,
                      h_out_ref, x_stage, h_scratch, sem,
                      *, t_chunk, b_pad, compute_dtype):
    """One grid step processes `t_chunk` timesteps for the whole padded batch.

    tokens_ref : SMEM (T, B_pad) int32   (scalar prefetch)
    emb_hbm    : HBM  (V, E)             (memory_space=ANY, manual DMA gather)
    w_ih_ref   : VMEM (E, H_pad)     compute_dtype
    w_hh_ref   : VMEM (H_pad, H_pad) compute_dtype
    bias_ref   : VMEM (1, H_pad)     f32   (b_ih + b_hh fused)
    h_out_ref  : VMEM (B_pad, H_pad) f32   (written on the last grid step)
    x_stage    : VMEM (t_chunk*B_pad, E) f32 scratch (gather staging)
    h_scratch  : VMEM (B_pad, H_pad) f32 scratch (carried hidden state)
    """
    ci = pl.program_id(0)
    t0 = ci * t_chunk

    @pl.when(ci == 0)
    def _init():
        h_scratch[...] = jnp.zeros_like(h_scratch)

    # ---- fused embedding gather: one small DMA per (timestep, batch row) ----
    copies = []
    for tl in range(t_chunk):
        for b in range(b_pad):
            tok = tokens_ref[t0 + tl, b]
            cp = pltpu.make_async_copy(
                emb_hbm.at[pl.ds(tok, 1)],
                x_stage.at[pl.ds(tl * b_pad + b, 1)],
                sem.at[0])
            cp.start()
            copies.append(cp)
    for cp in copies:
        cp.wait()

    # ---- hoisted input projection for the whole chunk (MXU, f32 accumulate) --
    x = x_stage[...].astype(compute_dtype)                      # (t_chunk*B_pad, E)
    pre = (jnp.dot(x, w_ih_ref[...], preferred_element_type=jnp.float32)
           + bias_ref[...])                                     # (t_chunk*B_pad, H_pad) f32

    # ---- tanh recurrence: only h @ W_hh is on the serial chain --------------
    w_hh = w_hh_ref[...]
    h_pad = w_hh.shape[1]
    h = h_scratch[...]
    for tl in range(t_chunk):     # static loop bounded by t_chunk (not by T)
        p_t = jax.lax.slice(pre, (tl * b_pad, 0), ((tl + 1) * b_pad, h_pad))
        h = jnp.tanh(p_t + jnp.dot(h.astype(compute_dtype), w_hh,
                                   preferred_element_type=jnp.float32))
    h_scratch[...] = h

    @pl.when(ci == pl.num_programs(0) - 1)
    def _write():
        h_out_ref[...] = h


def _fc_kernel(h_ref, w_fc_ref, b_fc_ref, out_ref, *, compute_dtype):
    out_ref[...] = (jnp.dot(h_ref[...].astype(compute_dtype), w_fc_ref[...],
                            preferred_element_type=jnp.float32)
                    + b_fc_ref[...]).astype(out_ref.dtype)


def rnn_language_model_pallas(tokens, params, *, t_chunk=None,
                              compute_dtype=jnp.bfloat16):
    """tokens: (B, T) int32. params: dict of weights. Returns (B, vocab) logits."""
    emb = params["embedding"]          # (V, E)
    w_ih = params["w_ih"]              # (E, H)   (PyTorch weight_ih_l0.T)
    w_hh = params["w_hh"]              # (H, H)   (PyTorch weight_hh_l0.T)
    b_ih = params["b_ih"]              # (1, H)
    b_hh = params["b_hh"]              # (1, H)
    w_fc = params["w_fc"]              # (H, V)   (PyTorch fc.weight.T)
    b_fc = params["b_fc"]              # (1, V)

    B, T = tokens.shape
    V, E = emb.shape
    H = w_hh.shape[0]

    B_pad = _round_up(max(B, 8), 8)     # sublane multiple
    H_pad = _round_up(H, 128)           # lane-dense hidden dim
    V_pad = _round_up(V, 128)           # lane-dense vocab dim
    cbytes = jnp.dtype(compute_dtype).itemsize

    # time-major tokens; padded batch rows use token 0 (sliced off at the end).
    tokens_tm = jnp.transpose(tokens, (1, 0)).astype(jnp.int32)      # (T, B)
    if B_pad != B:
        tokens_tm = jnp.pad(tokens_tm, ((0, 0), (0, B_pad - B)))

    # zero-padded weights; MXU operands in compute_dtype, biases in f32.
    emb_f32 = emb.astype(jnp.float32)
    w_ih_p = jnp.pad(w_ih, ((0, 0), (0, H_pad - H))).astype(compute_dtype)
    w_hh_p = jnp.pad(w_hh, ((0, H_pad - H), (0, H_pad - H))).astype(compute_dtype)
    bias_p = jnp.pad((b_ih + b_hh).reshape(1, H),
                     ((0, 0), (0, H_pad - H))).astype(jnp.float32)
    w_fc_p = jnp.pad(w_fc, ((0, H_pad - H), (0, V_pad - V))).astype(compute_dtype)
    b_fc_p = jnp.pad(b_fc.reshape(1, V),
                     ((0, 0), (0, V_pad - V))).astype(jnp.float32)

    # ----- T chunking: keep staging + pre-activation VMEM bounded ------------
    if t_chunk is None:
        budget = 4 * 1024 * 1024                          # VMEM budget per chunk
        per_step = B_pad * (E * 4 + H_pad * 4)            # staging + pre rows
        cap = max(1, min(32, budget // max(per_step, 1)))
        t_chunk = _largest_divisor_leq(T, cap)
    assert T % t_chunk == 0, "t_chunk must divide T"
    num_chunks = T // t_chunk

    # ---------------- Kernel 1: fused gather + recurrence --------------------
    rec_cost = pl.CostEstimate(
        flops=2 * T * B_pad * (E * H_pad + H_pad * H_pad),
        transcendentals=T * B_pad * H_pad,
        bytes_accessed=(4 * T * B_pad * E
                        + cbytes * (E * H_pad + H_pad * H_pad)
                        + 4 * (H_pad + B_pad * H_pad)),
    )
    h_last = pl.pallas_call(
        functools.partial(_rnn_chunk_kernel, t_chunk=t_chunk, b_pad=B_pad,
                          compute_dtype=compute_dtype),
        out_shape=jax.ShapeDtypeStruct((B_pad, H_pad), jnp.float32),
        grid_spec=pltpu.PrefetchScalarGridSpec(
            num_scalar_prefetch=1,                         # tokens -> SMEM
            grid=(num_chunks,),
            in_specs=[
                pl.BlockSpec(memory_space=pl.ANY),                    # emb (HBM)
                pl.BlockSpec((E, H_pad), lambda i, tok: (0, 0)),      # w_ih
                pl.BlockSpec((H_pad, H_pad), lambda i, tok: (0, 0)),  # w_hh
                pl.BlockSpec((1, H_pad), lambda i, tok: (0, 0)),      # fused bias
            ],
            out_specs=pl.BlockSpec((B_pad, H_pad), lambda i, tok: (0, 0)),
            scratch_shapes=[
                pltpu.VMEM((t_chunk * B_pad, E), jnp.float32),   # gather staging
                pltpu.VMEM((B_pad, H_pad), jnp.float32),         # carried hidden
                pltpu.SemaphoreType.DMA((1,)),
            ],
        ),
        compiler_params=pltpu.CompilerParams(
            dimension_semantics=("arbitrary",),
            vmem_limit_bytes=32 * 1024 * 1024),
        cost_estimate=rec_cost,
    )(tokens_tm, emb_f32, w_ih_p, w_hh_p, bias_p)

    # ---------------- Kernel 2: final FC, tiled over the vocab dim -----------
    V_TILE = 128
    for cand in (1024, 512, 256):
        if V_pad % cand == 0:
            need = 2 * (H_pad * cand * cbytes + cand * 4 + B_pad * cand * 4)
            if need <= 8 * 1024 * 1024:                    # double-buffered budget
                V_TILE = cand
                break

    fc_cost = pl.CostEstimate(
        flops=2 * B_pad * H_pad * V_pad,
        transcendentals=0,
        bytes_accessed=(4 * B_pad * H_pad + cbytes * H_pad * V_pad
                        + 4 * V_pad + 4 * B_pad * V_pad),
    )
    logits = pl.pallas_call(
        functools.partial(_fc_kernel, compute_dtype=compute_dtype),
        out_shape=jax.ShapeDtypeStruct((B_pad, V_pad), jnp.float32),
        grid=(V_pad // V_TILE,),
        in_specs=[
            pl.BlockSpec((B_pad, H_pad), lambda j: (0, 0)),       # last hidden
            pl.BlockSpec((H_pad, V_TILE), lambda j: (0, j)),      # w_fc tile
            pl.BlockSpec((1, V_TILE), lambda j: (0, j)),          # b_fc tile
        ],
        out_specs=pl.BlockSpec((B_pad, V_TILE), lambda j: (0, j)),
        compiler_params=pltpu.CompilerParams(
            dimension_semantics=("parallel",),
            vmem_limit_bytes=32 * 1024 * 1024),
        cost_estimate=fc_cost,
    )(h_last, w_fc_p, b_fc_p)

    return logits[:B, :V]


def rnn_language_model_ref(tokens, params):
    """Pure-JAX f32 reference reproducing the PyTorch forward exactly."""
    emb = params["embedding"]
    embedded = jnp.take(emb, tokens, axis=0)           # (B, T, E)
    B, T, E = embedded.shape
    H = params["w_hh"].shape[0]
    h = jnp.zeros((B, H), jnp.float32)
    for t in range(T):
        h = jnp.tanh(embedded[:, t, :] @ params["w_ih"] + params["b_ih"]
                     + h @ params["w_hh"] + params["b_hh"])
    return h @ params["w_fc"] + params["b_fc"]


def init_params(key, vocab_size, embed_dim, hidden_dim):
    ks = jax.random.split(key, 7)
    s_rnn = 1.0 / jnp.sqrt(hidden_dim)
    s_fc = 1.0 / jnp.sqrt(hidden_dim)
    return {
        "embedding": jax.random.normal(ks[0], (vocab_size, embed_dim), jnp.float32),
        "w_ih": jax.random.uniform(ks[1], (embed_dim, hidden_dim), jnp.float32, -s_rnn, s_rnn),
        "w_hh": jax.random.uniform(ks[2], (hidden_dim, hidden_dim), jnp.float32, -s_rnn, s_rnn),
        "b_ih": jax.random.uniform(ks[3], (1, hidden_dim), jnp.float32, -s_rnn, s_rnn),
        "b_hh": jax.random.uniform(ks[4], (1, hidden_dim), jnp.float32, -s_rnn, s_rnn),
        "w_fc": jax.random.uniform(ks[5], (hidden_dim, vocab_size), jnp.float32, -s_fc, s_fc),
        "b_fc": jax.random.uniform(ks[6], (1, vocab_size), jnp.float32, -s_fc, s_fc),
    }


if __name__ == "__main__":
    vocab_size, embed_dim, hidden_dim = 128, 32, 32
    B, T = 2, 8

    key = jax.random.PRNGKey(0)
    k_tok, k_par = jax.random.split(key)
    tokens = jax.random.randint(k_tok, (B, T), 0, vocab_size, dtype=jnp.int32)
    params = init_params(k_par, vocab_size, embed_dim, hidden_dim)

    ref = jax.block_until_ready(rnn_language_model_ref(tokens, params))

    # bf16 MXU operands (f32 accumulation), forced 2 chunks of 4 timesteps so
    # the scratch-carried hidden state across grid steps is exercised.
    # bf16 operands need a relaxed tolerance vs the f32 reference.
    out_bf16 = jax.block_until_ready(
        rnn_language_model_pallas(tokens, params, t_chunk=4))
    assert out_bf16.shape == (B, vocab_size)
    assert jnp.allclose(out_bf16, ref, atol=5e-2, rtol=5e-2), "bf16 path mismatch"

    # Strict f32 path (single chunk) checked at the original 1e-4 tolerance.
    out_f32 = jax.block_until_ready(
        rnn_language_model_pallas(tokens, params, compute_dtype=jnp.float32))
    assert out_f32.shape == (B, vocab_size)
    assert jnp.allclose(out_f32, ref, atol=1e-4, rtol=1e-4), "f32 path mismatch"

    print("KERNEL_OK")
</pallas_src>

<mosaic_0001>
module attributes {stable_mosaic.version = 11 : i64} {
  func.func @_rnn_chunk_kernel(%arg0: i32, %arg1: memref<8x8xi32, #tpu.memory_space<smem>>, %arg2: memref<128x32xf32, #tpu.memory_space<any>>, %arg3: memref<32x128xbf16, #tpu.memory_space<vmem>>, %arg4: memref<128x128xbf16, #tpu.memory_space<vmem>>, %arg5: memref<1x128xf32, #tpu.memory_space<vmem>>, %arg6: memref<8x128xf32, #tpu.memory_space<vmem>>, %arg7: memref<32x32xf32, #tpu.memory_space<vmem>>, %arg8: memref<8x128xf32, #tpu.memory_space<vmem>>, %arg9: memref<1x!tpu.dma_semaphore, #tpu.memory_space<semaphore_mem>>) attributes {dimension_semantics = [#tpu.dimension_semantics<arbitrary>], iteration_bounds = array<i64: 2>, scalar_prefetch = 1 : i64, scratch_operands = 3 : i64, tpu.core_type = #tpu.core_type<tc>, window_params = [{}, {pipeline_mode = #tpu.pipeline_mode<synchronous>, transform_indices = @transform_1, window_bounds = array<i64: 32, 128>}, {pipeline_mode = #tpu.pipeline_mode<synchronous>, transform_indices = @transform_2, window_bounds = array<i64: 128, 128>}, {pipeline_mode = #tpu.pipeline_mode<synchronous>, transform_indices = @transform_3, window_bounds = array<i64: 1, 128>}, {pipeline_mode = #tpu.pipeline_mode<synchronous>, transform_indices = @transform_4, window_bounds = array<i64: 8, 128>}]} {
    %c4_i32 = arith.constant 4 : i32
    %0 = arith.muli %arg0, %c4_i32 : i32
    %c0_i32 = arith.constant 0 : i32
    %1 = arith.cmpi eq, %arg0, %c0_i32 : i32
    %2 = arith.extui %1 : i1 to i32
    %c0_i32_0 = arith.constant 0 : i32
    %3 = arith.cmpi ne, %2, %c0_i32_0 : i32
    scf.if %3 {
      %cst_301 = arith.constant 0.000000e+00 : f32
      %389 = vector.broadcast %cst_301 : f32 to vector<8x128xf32>
      %c0_302 = arith.constant 0 : index
      %c0_303 = arith.constant 0 : index
      %390 = vector.load %arg8[%c0_302, %c0_303] : memref<8x128xf32, #tpu.memory_space<vmem>>, vector<8x128xf32>
      tpu.vector_store %arg8[%c0_302, %c0_303], %389 {strides = array<i32>} : memref<8x128xf32, #tpu.memory_space<vmem>>, vector<8x128xf32>,
    } else {
    }
    %c0_i32_1 = arith.constant 0 : i32
    %4 = arith.addi %0, %c0_i32_1 : i32
    %5 = arith.index_cast %4 : i32 to index
    %c0 = arith.constant 0 : index
    %6 = memref.load %arg1[%5, %c0] : memref<8x8xi32, #tpu.memory_space<smem>>
    %c0_i32_2 = arith.constant 0 : i32
    %c0_i32_3 = arith.constant 0 : i32
    %7 = tpu.memref_slice %arg2[%6, %c0_i32_3] : memref<128x32xf32, #tpu.memory_space<any>> -> memref<1x32xf32, #tpu.memory_space<any>>
    %c0_i32_4 = arith.constant 0 : i32
    %c0_i32_5 = arith.constant 0 : i32
    %8 = tpu.memref_slice %arg7[%c0_i32_4, %c0_i32_5] : memref<32x32xf32, #tpu.memory_space<vmem>> -> memref<1x32xf32, #tpu.memory_space<vmem>>
    %9 = tpu.memref_slice %arg9[%c0_i32_2] : memref<1x!tpu.dma_semaphore, #tpu.memory_space<semaphore_mem>> -> memref<1x!tpu.dma_semaphore, #tpu.memory_space<semaphore_mem>>
    %10 = tpu.memref_squeeze %9 : memref<1x!tpu.dma_semaphore, #tpu.memory_space<semaphore_mem>> -> memref<!tpu.dma_semaphore, #tpu.memory_space<semaphore_mem>>
    tpu.enqueue_dma source(%7 : memref<1x32xf32, #tpu.memory_space<any>>) target(%8 : memref<1x32xf32, #tpu.memory_space<vmem>>) target_semaphore(%10 : memref<!tpu.dma_semaphore, #tpu.memory_space<semaphore_mem>>)
    %c0_i32_6 = arith.constant 0 : i32
    %11 = arith.addi %0, %c0_i32_6 : i32
    %12 = arith.index_cast %11 : i32 to index
    %c1 = arith.constant 1 : index
    %13 = memref.load %arg1[%12, %c1] : memref<8x8xi32, #tpu.memory_space<smem>>
    %c0_i32_7 = arith.constant 0 : i32
    %c0_i32_8 = arith.constant 0 : i32
    %14 = tpu.memref_slice %arg2[%13, %c0_i32_8] : memref<128x32xf32, #tpu.memory_space<any>> -> memref<1x32xf32, #tpu.memory_space<any>>
    %c1_i32 = arith.constant 1 : i32
    %c0_i32_9 = arith.constant 0 : i32
    %15 = tpu.memref_slice %arg7[%c1_i32, %c0_i32_9] : memref<32x32xf32, #tpu.memory_space<vmem>> -> memref<1x32xf32, #tpu.memory_space<vmem>>
    %16 = tpu.memref_slice %arg9[%c0_i32_7] : memref<1x!tpu.dma_semaphore, #tpu.memory_space<semaphore_mem>> -> memref<1x!tpu.dma_semaphore, #tpu.memory_space<semaphore_mem>>
    %17 = tpu.memref_squeeze %16 : memref<1x!tpu.dma_semaphore, #tpu.memory_space<semaphore_mem>> -> memref<!tpu.dma_semaphore, #tpu.memory_space<semaphore_mem>>
    tpu.enqueue_dma source(%14 : memref<1x32xf32, #tpu.memory_space<any>>) target(%15 : memref<1x32xf32, #tpu.memory_space<vmem>>) target_semaphore(%17 : memref<!tpu.dma_semaphore, #tpu.memory_space<semaphore_mem>>)
    %c0_i32_10 = arith.constant 0 : i32
    %18 = arith.addi %0, %c0_i32_10 : i32
    %19 = arith.index_cast %18 : i32 to index
    %c2 = arith.constant 2 : index
    %20 = memref.load %arg1[%19, %c2] : memref<8x8xi32, #tpu.memory_space<smem>>
    %c0_i32_11 = arith.constant 0 : i32
    %c0_i32_12 = arith.constant 0 : i32
    %21 = tpu.memref_slice %arg2[%20, %c0_i32_12] : memref<128x32xf32, #tpu.memory_space<any>> -> memref<1x32xf32, #tpu.memory_space<any>>
    %c2_i32 = arith.constant 2 : i32
    %c0_i32_13 = arith.constant 0 : i32
    %22 = tpu.memref_slice %arg7[%c2_i32, %c0_i32_13] : memref<32x32xf32, #tpu.memory_space<vmem>> -> memref<1x32xf32, #tpu.memory_space<vmem>>
    %23 = tpu.memref_slice %arg9[%c0_i32_11] : memref<1x!tpu.dma_semaphore, #tpu.memory_space<semaphore_mem>> -> memref<1x!tpu.dma_semaphore, #tpu.memory_space<semaphore_mem>>
    %24 = tpu.memref_squeeze %23 : memref<1x!tpu.dma_semaphore, #tpu.memory_space<semaphore_mem>> -> memref<!tpu.dma_semaphore, #tpu.memory_space<semaphore_mem>>
    tpu.enqueue_dma source(%21 : memref<1x32xf32, #tpu.memory_space<any>>) target(%22 : memref<1x32xf32, #tpu.memory_space<vmem>>) target_semaphore(%24 : memref<!tpu.dma_semaphore, #tpu.memory_space<semaphore_mem>>)
    %c0_i32_14 = arith.constant 0 : i32
    %25 = arith.addi %0, %c0_i32_14 : i32
    %26 = arith.index_cast %25 : i32 to index
    %c3 = arith.constant 3 : index
    %27 = memref.load %arg1[%26, %c3] : memref<8x8xi32, #tpu.memory_space<smem>>
    %c0_i32_15 = arith.constant 0 : i32
    %c0_i32_16 = arith.constant 0 : i32
    %28 = tpu.memref_slice %arg2[%27, %c0_i32_16] : memref<128x32xf32, #tpu.memory_space<any>> -> memref<1x32xf32, #tpu.memory_space<any>>
    %c3_i32 = arith.constant 3 : i32
    %c0_i32_17 = arith.constant 0 : i32
    %29 = tpu.memref_slice %arg7[%c3_i32, %c0_i32_17] : memref<32x32xf32, #tpu.memory_space<vmem>> -> memref<1x32xf32, #tpu.memory_space<vmem>>
    %30 = tpu.memref_slice %arg9[%c0_i32_15] : memref<1x!tpu.dma_semaphore, #tpu.memory_space<semaphore_mem>> -> memref<1x!tpu.dma_semaphore, #tpu.memory_space<semaphore_mem>>
    %31 = tpu.memref_squeeze %30 : memref<1x!tpu.dma_semaphore, #tpu.memory_space<semaphore_mem>> -> memref<!tpu.dma_semaphore, #tpu.memory_space<semaphore_mem>>
    tpu.enqueue_dma source(%28 : memref<1x32xf32, #tpu.memory_space<any>>) target(%29 : memref<1x32xf32, #tpu.memory_space<vmem>>) target_semaphore(%31 : memref<!tpu.dma_semaphore, #tpu.memory_space<semaphore_mem>>)
    %c0_i32_18 = arith.constant 0 : i32
    %32 = arith.addi %0, %c0_i32_18 : i32
    %33 = arith.index_cast %32 : i32 to index
    %c4 = arith.constant 4 : index
    %34 = memref.load %arg1[%33, %c4] : memref<8x8xi32, #tpu.memory_space<smem>>
    %c0_i32_19 = arith.constant 0 : i32
    %c0_i32_20 = arith.constant 0 : i32
    %35 = tpu.memref_slice %arg2[%34, %c0_i32_20] : memref<128x32xf32, #tpu.memory_space<any>> -> memref<1x32xf32, #tpu.memory_space<any>>
    %c4_i32_21 = arith.constant 4 : i32
    %c0_i32_22 = arith.constant 0 : i32
    %36 = tpu.memref_slice %arg7[%c4_i32_21, %c0_i32_22] : memref<32x32xf32, #tpu.memory_space<vmem>> -> memref<1x32xf32, #tpu.memory_space<vmem>>
    %37 = tpu.memref_slice %arg9[%c0_i32_19] : memref<1x!tpu.dma_semaphore, #tpu.memory_space<semaphore_mem>> -> memref<1x!tpu.dma_semaphore, #tpu.memory_space<semaphore_mem>>
    %38 = tpu.memref_squeeze %37 : memref<1x!tpu.dma_semaphore, #tpu.memory_space<semaphore_mem>> -> memref<!tpu.dma_semaphore, #tpu.memory_space<semaphore_mem>>
    tpu.enqueue_dma source(%35 : memref<1x32xf32, #tpu.memory_space<any>>) target(%36 : memref<1x32xf32, #tpu.memory_space<vmem>>) target_semaphore(%38 : memref<!tpu.dma_semaphore, #tpu.memory_space<semaphore_mem>>)
    %c0_i32_23 = arith.constant 0 : i32
    %39 = arith.addi %0, %c0_i32_23 : i32
    %40 = arith.index_cast %39 : i32 to index
    %c5 = arith.constant 5 : index
    %41 = memref.load %arg1[%40, %c5] : memref<8x8xi32, #tpu.memory_space<smem>>
    %c0_i32_24 = arith.constant 0 : i32
    %c0_i32_25 = arith.constant 0 : i32
    %42 = tpu.memref_slice %arg2[%41, %c0_i32_25] : memref<128x32xf32, #tpu.memory_space<any>> -> memref<1x32xf32, #tpu.memory_space<any>>
    %c5_i32 = arith.constant 5 : i32
    %c0_i32_26 = arith.constant 0 : i32
    %43 = tpu.memref_slice %arg7[%c5_i32, %c0_i32_26] : memref<32x32xf32, #tpu.memory_space<vmem>> -> memref<1x32xf32, #tpu.memory_space<vmem>>
    %44 = tpu.memref_slice %arg9[%c0_i32_24] : memref<1x!tpu.dma_semaphore, #tpu.memory_space<semaphore_mem>> -> memref<1x!tpu.dma_semaphore, #tpu.memory_space<semaphore_mem>>
    %45 = tpu.memref_squeeze %44 : memref<1x!tpu.dma_semaphore, #tpu.memory_space<semaphore_mem>> -> memref<!tpu.dma_semaphore, #tpu.memory_space<semaphore_mem>>
    tpu.enqueue_dma source(%42 : memref<1x32xf32, #tpu.memory_space<any>>) target(%43 : memref<1x32xf32, #tpu.memory_space<vmem>>) target_semaphore(%45 : memref<!tpu.dma_semaphore, #tpu.memory_space<semaphore_mem>>)
    %c0_i32_27 = arith.constant 0 : i32
    %46 = arith.addi %0, %c0_i32_27 : i32
    %47 = arith.index_cast %46 : i32 to index
    %c6 = arith.constant 6 : index
    %48 = memref.load %arg1[%47, %c6] : memref<8x8xi32, #tpu.memory_space<smem>>
    %c0_i32_28 = arith.constant 0 : i32
    %c0_i32_29 = arith.constant 0 : i32
    %49 = tpu.memref_slice %arg2[%48, %c0_i32_29] : memref<128x32xf32, #tpu.memory_space<any>> -> memref<1x32xf32, #tpu.memory_space<any>>
    %c6_i32 = arith.constant 6 : i32
    %c0_i32_30 = arith.constant 0 : i32
    %50 = tpu.memref_slice %arg7[%c6_i32, %c0_i32_30] : memref<32x32xf32, #tpu.memory_space<vmem>> -> memref<1x32xf32, #tpu.memory_space<vmem>>
    %51 = tpu.memref_slice %arg9[%c0_i32_28] : memref<1x!tpu.dma_semaphore, #tpu.memory_space<semaphore_mem>> -> memref<1x!tpu.dma_semaphore, #tpu.memory_space<semaphore_mem>>
    %52 = tpu.memref_squeeze %51 : memref<1x!tpu.dma_semaphore, #tpu.memory_space<semaphore_mem>> -> memref<!tpu.dma_semaphore, #tpu.memory_space<semaphore_mem>>
    tpu.enqueue_dma source(%49 : memref<1x32xf32, #tpu.memory_space<any>>) target(%50 : memref<1x32xf32, #tpu.memory_space<vmem>>) target_semaphore(%52 : memref<!tpu.dma_semaphore, #tpu.memory_space<semaphore_mem>>)
    %c0_i32_31 = arith.constant 0 : i32
    %53 = arith.addi %0, %c0_i32_31 : i32
    %54 = arith.index_cast %53 : i32 to index
    %c7 = arith.constant 7 : index
    %55 = memref.load %arg1[%54, %c7] : memref<8x8xi32, #tpu.memory_space<smem>>
    %c0_i32_32 = arith.constant 0 : i32
    %c0_i32_33 = arith.constant 0 : i32
    %56 = tpu.memref_slice %arg2[%55, %c0_i32_33] : memref<128x32xf32, #tpu.memory_space<any>> -> memref<1x32xf32, #tpu.memory_space<any>>
    %c7_i32 = arith.constant 7 : i32
    %c0_i32_34 = arith.constant 0 : i32
    %57 = tpu.memref_slice %arg7[%c7_i32, %c0_i32_34] : memref<32x32xf32, #tpu.memory_space<vmem>> -> memref<1x32xf32, #tpu.memory_space<vmem>>
    %58 = tpu.memref_slice %arg9[%c0_i32_32] : memref<1x!tpu.dma_semaphore, #tpu.memory_space<semaphore_mem>> -> memref<1x!tpu.dma_semaphore, #tpu.memory_space<semaphore_mem>>
    %59 = tpu.memref_squeeze %58 : memref<1x!tpu.dma_semaphore, #tpu.memory_space<semaphore_mem>> -> memref<!tpu.dma_semaphore, #tpu.memory_space<semaphore_mem>>
    tpu.enqueue_dma source(%56 : memref<1x32xf32, #tpu.memory_space<any>>) target(%57 : memref<1x32xf32, #tpu.memory_space<vmem>>) target_semaphore(%59 : memref<!tpu.dma_semaphore, #tpu.memory_space<semaphore_mem>>)
    %c1_i32_35 = arith.constant 1 : i32
    %60 = arith.addi %0, %c1_i32_35 : i32
    %61 = arith.index_cast %60 : i32 to index
    %c0_36 = arith.constant 0 : index
    %62 = memref.load %arg1[%61, %c0_36] : memref<8x8xi32, #tpu.memory_space<smem>>
    %c0_i32_37 = arith.constant 0 : i32
    %c0_i32_38 = arith.constant 0 : i32
    %63 = tpu.memref_slice %arg2[%62, %c0_i32_38] : memref<128x32xf32, #tpu.memory_space<any>> -> memref<1x32xf32, #tpu.memory_space<any>>
    %c8_i32 = arith.constant 8 : i32
    %c0_i32_39 = arith.constant 0 : i32
    %64 = tpu.memref_slice %arg7[%c8_i32, %c0_i32_39] : memref<32x32xf32, #tpu.memory_space<vmem>> -> memref<1x32xf32, #tpu.memory_space<vmem>>
    %65 = tpu.memref_slice %arg9[%c0_i32_37] : memref<1x!tpu.dma_semaphore, #tpu.memory_space<semaphore_mem>> -> memref<1x!tpu.dma_semaphore, #tpu.memory_space<semaphore_mem>>
    %66 = tpu.memref_squeeze %65 : memref<1x!tpu.dma_semaphore, #tpu.memory_space<semaphore_mem>> -> memref<!tpu.dma_semaphore, #tpu.memory_space<semaphore_mem>>
    tpu.enqueue_dma source(%63 : memref<1x32xf32, #tpu.memory_space<any>>) target(%64 : memref<1x32xf32, #tpu.memory_space<vmem>>) target_semaphore(%66 : memref<!tpu.dma_semaphore, #tpu.memory_space<semaphore_mem>>)
    %c1_i32_40 = arith.constant 1 : i32
    %67 = arith.addi %0, %c1_i32_40 : i32
    %68 = arith.index_cast %67 : i32 to index
    %c1_41 = arith.constant 1 : index
    %69 = memref.load %arg1[%68, %c1_41] : memref<8x8xi32, #tpu.memory_space<smem>>
    %c0_i32_42 = arith.constant 0 : i32
    %c0_i32_43 = arith.constant 0 : i32
    %70 = tpu.memref_slice %arg2[%69, %c0_i32_43] : memref<128x32xf32, #tpu.memory_space<any>> -> memref<1x32xf32, #tpu.memory_space<any>>
    %c9_i32 = arith.constant 9 : i32
    %c0_i32_44 = arith.constant 0 : i32
    %71 = tpu.memref_slice %arg7[%c9_i32, %c0_i32_44] : memref<32x32xf32, #tpu.memory_space<vmem>> -> memref<1x32xf32, #tpu.memory_space<vmem>>
    %72 = tpu.memref_slice %arg9[%c0_i32_42] : memref<1x!tpu.dma_semaphore, #tpu.memory_space<semaphore_mem>> -> memref<1x!tpu.dma_semaphore, #tpu.memory_space<semaphore_mem>>
    %73 = tpu.memref_squeeze %72 : memref<1x!tpu.dma_semaphore, #tpu.memory_space<semaphore_mem>> -> memref<!tpu.dma_semaphore, #tpu.memory_space<semaphore_mem>>
    tpu.enqueue_dma source(%70 : memref<1x32xf32, #tpu.memory_space<any>>) target(%71 : memref<1x32xf32, #tpu.memory_space<vmem>>) target_semaphore(%73 : memref<!tpu.dma_semaphore, #tpu.memory_space<semaphore_mem>>)
    %c1_i32_45 = arith.constant 1 : i32
    %74 = arith.addi %0, %c1_i32_45 : i32
    %75 = arith.index_cast %74 : i32 to index
    %c2_46 = arith.constant 2 : index
    %76 = memref.load %arg1[%75, %c2_46] : memref<8x8xi32, #tpu.memory_space<smem>>
    %c0_i32_47 = arith.constant 0 : i32
    %c0_i32_48 = arith.constant 0 : i32
    %77 = tpu.memref_slice %arg2[%76, %c0_i32_48] : memref<128x32xf32, #tpu.memory_space<any>> -> memref<1x32xf32, #tpu.memory_space<any>>
    %c10_i32 = arith.constant 10 : i32
    %c0_i32_49 = arith.constant 0 : i32
    %78 = tpu.memref_slice %arg7[%c10_i32, %c0_i32_49] : memref<32x32xf32, #tpu.memory_space<vmem>> -> memref<1x32xf32, #tpu.memory_space<vmem>>
    %79 = tpu.memref_slice %arg9[%c0_i32_47] : memref<1x!tpu.dma_semaphore, #tpu.memory_space<semaphore_mem>> -> memref<1x!tpu.dma_semaphore, #tpu.memory_space<semaphore_mem>>
    %80 = tpu.memref_squeeze %79 : memref<1x!tpu.dma_semaphore, #tpu.memory_space<semaphore_mem>> -> memref<!tpu.dma_semaphore, #tpu.memory_space<semaphore_mem>>
    tpu.enqueue_dma source(%77 : memref<1x32xf32, #tpu.memory_space<any>>) target(%78 : memref<1x32xf32, #tpu.memory_space<vmem>>) target_semaphore(%80 : memref<!tpu.dma_semaphore, #tpu.memory_space<semaphore_mem>>)
    %c1_i32_50 = arith.constant 1 : i32
    %81 = arith.addi %0, %c1_i32_50 : i32
    %82 = arith.index_cast %81 : i32 to index
    %c3_51 = arith.constant 3 : index
    %83 = memref.load %arg1[%82, %c3_51] : memref<8x8xi32, #tpu.memory_space<smem>>
    %c0_i32_52 = arith.constant 0 : i32
    %c0_i32_53 = arith.constant 0 : i32
    %84 = tpu.memref_slice %arg2[%83, %c0_i32_53] : memref<128x32xf32, #tpu.memory_space<any>> -> memref<1x32xf32, #tpu.memory_space<any>>
    %c11_i32 = arith.constant 11 : i32
    %c0_i32_54 = arith.constant 0 : i32
    %85 = tpu.memref_slice %arg7[%c11_i32, %c0_i32_54] : memref<32x32xf32, #tpu.memory_space<vmem>> -> memref<1x32xf32, #tpu.memory_space<vmem>>
    %86 = tpu.memref_slice %arg9[%c0_i32_52] : memref<1x!tpu.dma_semaphore, #tpu.memory_space<semaphore_mem>> -> memref<1x!tpu.dma_semaphore, #tpu.memory_space<semaphore_mem>>
    %87 = tpu.memref_squeeze %86 : memref<1x!tpu.dma_semaphore, #tpu.memory_space<semaphore_mem>> -> memref<!tpu.dma_semaphore, #tpu.memory_space<semaphore_mem>>
    tpu.enqueue_dma source(%84 : memref<1x32xf32, #tpu.memory_space<any>>) target(%85 : memref<1x32xf32, #tpu.memory_space<vmem>>) target_semaphore(%87 : memref<!tpu.dma_semaphore, #tpu.memory_space<semaphore_mem>>)
    %c1_i32_55 = arith.constant 1 : i32
    %88 = arith.addi %0, %c1_i32_55 : i32
    %89 = arith.index_cast %88 : i32 to index
    %c4_56 = arith.constant 4 : index
    %90 = memref.load %arg1[%89, %c4_56] : memref<8x8xi32, #tpu.memory_space<smem>>
    %c0_i32_57 = arith.constant 0 : i32
    %c0_i32_58 = arith.constant 0 : i32
    %91 = tpu.memref_slice %arg2[%90, %c0_i32_58] : memref<128x32xf32, #tpu.memory_space<any>> -> memref<1x32xf32, #tpu.memory_space<any>>
    %c12_i32 = arith.constant 12 : i32
    %c0_i32_59 = arith.constant 0 : i32
    %92 = tpu.memref_slice %arg7[%c12_i32, %c0_i32_59] : memref<32x32xf32, #tpu.memory_space<vmem>> -> memref<1x32xf32, #tpu.memory_space<vmem>>
    %93 = tpu.memref_slice %arg9[%c0_i32_57] : memref<1x!tpu.dma_semaphore, #tpu.memory_space<semaphore_mem>> -> memref<1x!tpu.dma_semaphore, #tpu.memory_space<semaphore_mem>>
    %94 = tpu.memref_squeeze %93 : memref<1x!tpu.dma_semaphore, #tpu.memory_space<semaphore_mem>> -> memref<!tpu.dma_semaphore, #tpu.memory_space<semaphore_mem>>
    tpu.enqueue_dma source(%91 : memref<1x32xf32, #tpu.memory_space<any>>) target(%92 : memref<1x32xf32, #tpu.memory_space<vmem>>) target_semaphore(%94 : memref<!tpu.dma_semaphore, #tpu.memory_space<semaphore_mem>>)
    %c1_i32_60 = arith.constant 1 : i32
    %95 = arith.addi %0, %c1_i32_60 : i32
    %96 = arith.index_cast %95 : i32 to index
    %c5_61 = arith.constant 5 : index
    %97 = memref.load %arg1[%96, %c5_61] : memref<8x8xi32, #tpu.memory_space<smem>>
    %c0_i32_62 = arith.constant 0 : i32
    %c0_i32_63 = arith.constant 0 : i32
    %98 = tpu.memref_slice %arg2[%97, %c0_i32_63] : memref<128x32xf32, #tpu.memory_space<any>> -> memref<1x32xf32, #tpu.memory_space<any>>
    %c13_i32 = arith.constant 13 : i32
    %c0_i32_64 = arith.constant 0 : i32
    %99 = tpu.memref_slice %arg7[%c13_i32, %c0_i32_64] : memref<32x32xf32, #tpu.memory_space<vmem>> -> memref<1x32xf32, #tpu.memory_space<vmem>>
    %100 = tpu.memref_slice %arg9[%c0_i32_62] : memref<1x!tpu.dma_semaphore, #tpu.memory_space<semaphore_mem>> -> memref<1x!tpu.dma_semaphore, #tpu.memory_space<semaphore_mem>>
    %101 = tpu.memref_squeeze %100 : memref<1x!tpu.dma_semaphore, #tpu.memory_space<semaphore_mem>> -> memref<!tpu.dma_semaphore, #tpu.memory_space<semaphore_mem>>
    tpu.enqueue_dma source(%98 : memref<1x32xf32, #tpu.memory_space<any>>) target(%99 : memref<1x32xf32, #tpu.memory_space<vmem>>) target_semaphore(%101 : memref<!tpu.dma_semaphore, #tpu.memory_space<semaphore_mem>>)
    %c1_i32_65 = arith.constant 1 : i32
    %102 = arith.addi %0, %c1_i32_65 : i32
    %103 = arith.index_cast %102 : i32 to index
    %c6_66 = arith.constant 6 : index
    %104 = memref.load %arg1[%103, %c6_66] : memref<8x8xi32, #tpu.memory_space<smem>>
    %c0_i32_67 = arith.constant 0 : i32
    %c0_i32_68 = arith.constant 0 : i32
    %105 = tpu.memref_slice %arg2[%104, %c0_i32_68] : memref<128x32xf32, #tpu.memory_space<any>> -> memref<1x32xf32, #tpu.memory_space<any>>
    %c14_i32 = arith.constant 14 : i32
    %c0_i32_69 = arith.constant 0 : i32
    %106 = tpu.memref_slice %arg7[%c14_i32, %c0_i32_69] : memref<32x32xf32, #tpu.memory_space<vmem>> -> memref<1x32xf32, #tpu.memory_space<vmem>>
    %107 = tpu.memref_slice %arg9[%c0_i32_67] : memref<1x!tpu.dma_semaphore, #tpu.memory_space<semaphore_mem>> -> memref<1x!tpu.dma_semaphore, #tpu.memory_space<semaphore_mem>>
    %108 = tpu.memref_squeeze %107 : memref<1x!tpu.dma_semaphore, #tpu.memory_space<semaphore_mem>> -> memref<!tpu.dma_semaphore, #tpu.memory_space<semaphore_mem>>
    tpu.enqueue_dma source(%105 : memref<1x32xf32, #tpu.memory_space<any>>) target(%106 : memref<1x32xf32, #tpu.memory_space<vmem>>) target_semaphore(%108 : memref<!tpu.dma_semaphore, #tpu.memory_space<semaphore_mem>>)
    %c1_i32_70 = arith.constant 1 : i32
    %109 = arith.addi %0, %c1_i32_70 : i32
    %110 = arith.index_cast %109 : i32 to index
    %c7_71 = arith.constant 7 : index
    %111 = memref.load %arg1[%110, %c7_71] : memref<8x8xi32, #tpu.memory_space<smem>>
    %c0_i32_72 = arith.constant 0 : i32
    %c0_i32_73 = arith.constant 0 : i32
    %112 = tpu.memref_slice %arg2[%111, %c0_i32_73] : memref<128x32xf32, #tpu.memory_space<any>> -> memref<1x32xf32, #tpu.memory_space<any>>
    %c15_i32 = arith.constant 15 : i32
    %c0_i32_74 = arith.constant 0 : i32
    %113 = tpu.memref_slice %arg7[%c15_i32, %c0_i32_74] : memref<32x32xf32, #tpu.memory_space<vmem>> -> memref<1x32xf32, #tpu.memory_space<vmem>>
    %114 = tpu.memref_slice %arg9[%c0_i32_72] : memref<1x!tpu.dma_semaphore, #tpu.memory_space<semaphore_mem>> -> memref<1x!tpu.dma_semaphore, #tpu.memory_space<semaphore_mem>>
    %115 = tpu.memref_squeeze %114 : memref<1x!tpu.dma_semaphore, #tpu.memory_space<semaphore_mem>> -> memref<!tpu.dma_semaphore, #tpu.memory_space<semaphore_mem>>
    tpu.enqueue_dma source(%112 : memref<1x32xf32, #tpu.memory_space<any>>) target(%113 : memref<1x32xf32, #tpu.memory_space<vmem>>) target_semaphore(%115 : memref<!tpu.dma_semaphore, #tpu.memory_space<semaphore_mem>>)
    %c2_i32_75 = arith.constant 2 : i32
    %116 = arith.addi %0, %c2_i32_75 : i32
    %117 = arith.index_cast %116 : i32 to index
    %c0_76 = arith.constant 0 : index
    %118 = memref.load %arg1[%117, %c0_76] : memref<8x8xi32, #tpu.memory_space<smem>>
    %c0_i32_77 = arith.constant 0 : i32
    %c0_i32_78 = arith.constant 0 : i32
    %119 = tpu.memref_slice %arg2[%118, %c0_i32_78] : memref<128x32xf32, #tpu.memory_space<any>> -> memref<1x32xf32, #tpu.memory_space<any>>
    %c16_i32 = arith.constant 16 : i32
    %c0_i32_79 = arith.constant 0 : i32
    %120 = tpu.memref_slice %arg7[%c16_i32, %c0_i32_79] : memref<32x32xf32, #tpu.memory_space<vmem>> -> memref<1x32xf32, #tpu.memory_space<vmem>>
    %121 = tpu.memref_slice %arg9[%c0_i32_77] : memref<1x!tpu.dma_semaphore, #tpu.memory_space<semaphore_mem>> -> memref<1x!tpu.dma_semaphore, #tpu.memory_space<semaphore_mem>>
    %122 = tpu.memref_squeeze %121 : memref<1x!tpu.dma_semaphore, #tpu.memory_space<semaphore_mem>> -> memref<!tpu.dma_semaphore, #tpu.memory_space<semaphore_mem>>
    tpu.enqueue_dma source(%119 : memref<1x32xf32, #tpu.memory_space<any>>) target(%120 : memref<1x32xf32, #tpu.memory_space<vmem>>) target_semaphore(%122 : memref<!tpu.dma_semaphore, #tpu.memory_space<semaphore_mem>>)
    %c2_i32_80 = arith.constant 2 : i32
    %123 = arith.addi %0, %c2_i32_80 : i32
    %124 = arith.index_cast %123 : i32 to index
    %c1_81 = arith.constant 1 : index
    %125 = memref.load %arg1[%124, %c1_81] : memref<8x8xi32, #tpu.memory_space<smem>>
    %c0_i32_82 = arith.constant 0 : i32
    %c0_i32_83 = arith.constant 0 : i32
    %126 = tpu.memref_slice %arg2[%125, %c0_i32_83] : memref<128x32xf32, #tpu.memory_space<any>> -> memref<1x32xf32, #tpu.memory_space<any>>
    %c17_i32 = arith.constant 17 : i32
    %c0_i32_84 = arith.constant 0 : i32
    %127 = tpu.memref_slice %arg7[%c17_i32, %c0_i32_84] : memref<32x32xf32, #tpu.memory_space<vmem>> -> memref<1x32xf32, #tpu.memory_space<vmem>>
    %128 = tpu.memref_slice %arg9[%c0_i32_82] : memref<1x!tpu.dma_semaphore, #tpu.memory_space<semaphore_mem>> -> memref<1x!tpu.dma_semaphore, #tpu.memory_space<semaphore_mem>>
    %129 = tpu.memref_squeeze %128 : memref<1x!tpu.dma_semaphore, #tpu.memory_space<semaphore_mem>> -> memref<!tpu.dma_semaphore, #tpu.memory_space<semaphore_mem>>
    tpu.enqueue_dma source(%126 : memref<1x32xf32, #tpu.memory_space<any>>) target(%127 : memref<1x32xf32, #tpu.memory_space<vmem>>) target_semaphore(%129 : memref<!tpu.dma_semaphore, #tpu.memory_space<semaphore_mem>>)
    %c2_i32_85 = arith.constant 2 : i32
    %130 = arith.addi %0, %c2_i32_85 : i32
    %131 = arith.index_cast %130 : i32 to index
    %c2_86 = arith.constant 2 : index
    %132 = memref.load %arg1[%131, %c2_86] : memref<8x8xi32, #tpu.memory_space<smem>>
    %c0_i32_87 = arith.constant 0 : i32
    %c0_i32_88 = arith.constant 0 : i32
    %133 = tpu.memref_slice %arg2[%132, %c0_i32_88] : memref<128x32xf32, #tpu.memory_space<any>> -> memref<1x32xf32, #tpu.memory_space<any>>
    %c18_i32 = arith.constant 18 : i32
    %c0_i32_89 = arith.constant 0 : i32
    %134 = tpu.memref_slice %arg7[%c18_i32, %c0_i32_89] : memref<32x32xf32, #tpu.memory_space<vmem>> -> memref<1x32xf32, #tpu.memory_space<vmem>>
    %135 = tpu.memref_slice %arg9[%c0_i32_87] : memref<1x!tpu.dma_semaphore, #tpu.memory_space<semaphore_mem>> -> memref<1x!tpu.dma_semaphore, #tpu.memory_space<semaphore_mem>>
    %136 = tpu.memref_squeeze %135 : memref<1x!tpu.dma_semaphore, #tpu.memory_space<semaphore_mem>> -> memref<!tpu.dma_semaphore, #tpu.memory_space<semaphore_mem>>
    tpu.enqueue_dma source(%133 : memref<1x32xf32, #tpu.memory_space<any>>) target(%134 : memref<1x32xf32, #tpu.memory_space<vmem>>) target_semaphore(%136 : memref<!tpu.dma_semaphore, #tpu.memory_space<semaphore_mem>>)
    %c2_i32_90 = arith.constant 2 : i32
    %137 = arith.addi %0, %c2_i32_90 : i32
    %138 = arith.index_cast %137 : i32 to index
    %c3_91 = arith.constant 3 : index
    %139 = memref.load %arg1[%138, %c3_91] : memref<8x8xi32, #tpu.memory_space<smem>>
    %c0_i32_92 = arith.constant 0 : i32
    %c0_i32_93 = arith.constant 0 : i32
    %140 = tpu.memref_slice %arg2[%139, %c0_i32_93] : memref<128x32xf32, #tpu.memory_space<any>> -> memref<1x32xf32, #tpu.memory_space<any>>
    %c19_i32 = arith.constant 19 : i32
    %c0_i32_94 = arith.constant 0 : i32
    %141 = tpu.memref_slice %arg7[%c19_i32, %c0_i32_94] : memref<32x32xf32, #tpu.memory_space<vmem>> -> memref<1x32xf32, #tpu.memory_space<vmem>>
    %142 = tpu.memref_slice %arg9[%c0_i32_92] : memref<1x!tpu.dma_semaphore, #tpu.memory_space<semaphore_mem>> -> memref<1x!tpu.dma_semaphore, #tpu.memory_space<semaphore_mem>>
    %143 = tpu.memref_squeeze %142 : memref<1x!tpu.dma_semaphore, #tpu.memory_space<semaphore_mem>> -> memref<!tpu.dma_semaphore, #tpu.memory_space<semaphore_mem>>
    tpu.enqueue_dma source(%140 : memref<1x32xf32, #tpu.memory_space<any>>) target(%141 : memref<1x32xf32, #tpu.memory_space<vmem>>) target_semaphore(%143 : memref<!tpu.dma_semaphore, #tpu.memory_space<semaphore_mem>>)
    %c2_i32_95 = arith.constant 2 : i32
    %144 = arith.addi %0, %c2_i32_95 : i32
    %145 = arith.index_cast %144 : i32 to index
    %c4_96 = arith.constant 4 : index
    %146 = memref.load %arg1[%145, %c4_96] : memref<8x8xi32, #tpu.memory_space<smem>>
    %c0_i32_97 = arith.constant 0 : i32
    %c0_i32_98 = arith.constant 0 : i32
    %147 = tpu.memref_slice %arg2[%146, %c0_i32_98] : memref<128x32xf32, #tpu.memory_space<any>> -> memref<1x32xf32, #tpu.memory_space<any>>
    %c20_i32 = arith.constant 20 : i32
    %c0_i32_99 = arith.constant 0 : i32
    %148 = tpu.memref_slice %arg7[%c20_i32, %c0_i32_99] : memref<32x32xf32, #tpu.memory_space<vmem>> -> memref<1x32xf32, #tpu.memory_space<vmem>>
    %149 = tpu.memref_slice %arg9[%c0_i32_97] : memref<1x!tpu.dma_semaphore, #tpu.memory_space<semaphore_mem>> -> memref<1x!tpu.dma_semaphore, #tpu.memory_space<semaphore_mem>>
    %150 = tpu.memref_squeeze %149 : memref<1x!tpu.dma_semaphore, #tpu.memory_space<semaphore_mem>> -> memref<!tpu.dma_semaphore, #tpu.memory_space<semaphore_mem>>
    tpu.enqueue_dma source(%147 : memref<1x32xf32, #tpu.memory_space<any>>) target(%148 : memref<1x32xf32, #tpu.memory_space<vmem>>) target_semaphore(%150 : memref<!tpu.dma_semaphore, #tpu.memory_space<semaphore_mem>>)
    %c2_i32_100 = arith.constant 2 : i32
    %151 = arith.addi %0, %c2_i32_100 : i32
    %152 = arith.index_cast %151 : i32 to index
    %c5_101 = arith.constant 5 : index
    %153 = memref.load %arg1[%152, %c5_101] : memref<8x8xi32, #tpu.memory_space<smem>>
    %c0_i32_102 = arith.constant 0 : i32
    %c0_i32_103 = arith.constant 0 : i32
    %154 = tpu.memref_slice %arg2[%153, %c0_i32_103] : memref<128x32xf32, #tpu.memory_space<any>> -> memref<1x32xf32, #tpu.memory_space<any>>
    %c21_i32 = arith.constant 21 : i32
    %c0_i32_104 = arith.constant 0 : i32
    %155 = tpu.memref_slice %arg7[%c21_i32, %c0_i32_104] : memref<32x32xf32, #tpu.memory_space<vmem>> -> memref<1x32xf32, #tpu.memory_space<vmem>>
    %156 = tpu.memref_slice %arg9[%c0_i32_102] : memref<1x!tpu.dma_semaphore, #tpu.memory_space<semaphore_mem>> -> memref<1x!tpu.dma_semaphore, #tpu.memory_space<semaphore_mem>>
    %157 = tpu.memref_squeeze %156 : memref<1x!tpu.dma_semaphore, #tpu.memory_space<semaphore_mem>> -> memref<!tpu.dma_semaphore, #tpu.memory_space<semaphore_mem>>
    tpu.enqueue_dma source(%154 : memref<1x32xf32, #tpu.memory_space<any>>) target(%155 : memref<1x32xf32, #tpu.memory_space<vmem>>) target_semaphore(%157 : memref<!tpu.dma_semaphore, #tpu.memory_space<semaphore_mem>>)
    %c2_i32_105 = arith.constant 2 : i32
    %158 = arith.addi %0, %c2_i32_105 : i32
    %159 = arith.index_cast %158 : i32 to index
    %c6_106 = arith.constant 6 : index
    %160 = memref.load %arg1[%159, %c6_106] : memref<8x8xi32, #tpu.memory_space<smem>>
    %c0_i32_107 = arith.constant 0 : i32
    %c0_i32_108 = arith.constant 0 : i32
    %161 = tpu.memref_slice %arg2[%160, %c0_i32_108] : memref<128x32xf32, #tpu.memory_space<any>> -> memref<1x32xf32, #tpu.memory_space<any>>
    %c22_i32 = arith.constant 22 : i32
    %c0_i32_109 = arith.constant 0 : i32
    %162 = tpu.memref_slice %arg7[%c22_i32, %c0_i32_109] : memref<32x32xf32, #tpu.memory_space<vmem>> -> memref<1x32xf32, #tpu.memory_space<vmem>>
    %163 = tpu.memref_slice %arg9[%c0_i32_107] : memref<1x!tpu.dma_semaphore, #tpu.memory_space<semaphore_mem>> -> memref<1x!tpu.dma_semaphore, #tpu.memory_space<semaphore_mem>>
    %164 = tpu.memref_squeeze %163 : memref<1x!tpu.dma_semaphore, #tpu.memory_space<semaphore_mem>> -> memref<!tpu.dma_semaphore, #tpu.memory_space<semaphore_mem>>
    tpu.enqueue_dma source(%161 : memref<1x32xf32, #tpu.memory_space<any>>) target(%162 : memref<1x32xf32, #tpu.memory_space<vmem>>) target_semaphore(%164 : memref<!tpu.dma_semaphore, #tpu.memory_space<semaphore_mem>>)
    %c2_i32_110 = arith.constant 2 : i32
    %165 = arith.addi %0, %c2_i32_110 : i32
    %166 = arith.index_cast %165 : i32 to index
    %c7_111 = arith.constant 7 : index
    %167 = memref.load %arg1[%166, %c7_111] : memref<8x8xi32, #tpu.memory_space<smem>>
    %c0_i32_112 = arith.constant 0 : i32
    %c0_i32_113 = arith.constant 0 : i32
    %168 = tpu.memref_slice %arg2[%167, %c0_i32_113] : memref<128x32xf32, #tpu.memory_space<any>> -> memref<1x32xf32, #tpu.memory_space<any>>
    %c23_i32 = arith.constant 23 : i32
    %c0_i32_114 = arith.constant 0 : i32
    %169 = tpu.memref_slice %arg7[%c23_i32, %c0_i32_114] : memref<32x32xf32, #tpu.memory_space<vmem>> -> memref<1x32xf32, #tpu.memory_space<vmem>>
    %170 = tpu.memref_slice %arg9[%c0_i32_112] : memref<1x!tpu.dma_semaphore, #tpu.memory_space<semaphore_mem>> -> memref<1x!tpu.dma_semaphore, #tpu.memory_space<semaphore_mem>>
    %171 = tpu.memref_squeeze %170 : memref<1x!tpu.dma_semaphore, #tpu.memory_space<semaphore_mem>> -> memref<!tpu.dma_semaphore, #tpu.memory_space<semaphore_mem>>
    tpu.enqueue_dma source(%168 : memref<1x32xf32, #tpu.memory_space<any>>) target(%169 : memref<1x32xf32, #tpu.memory_space<vmem>>) target_semaphore(%171 : memref<!tpu.dma_semaphore, #tpu.memory_space<semaphore_mem>>)
    %c3_i32_115 = arith.constant 3 : i32
    %172 = arith.addi %0, %c3_i32_115 : i32
    %173 = arith.index_cast %172 : i32 to index
    %c0_116 = arith.constant 0 : index
    %174 = memref.load %arg1[%173, %c0_116] : memref<8x8xi32, #tpu.memory_space<smem>>
    %c0_i32_117 = arith.constant 0 : i32
    %c0_i32_118 = arith.constant 0 : i32
    %175 = tpu.memref_slice %arg2[%174, %c0_i32_118] : memref<128x32xf32, #tpu.memory_space<any>> -> memref<1x32xf32, #tpu.memory_space<any>>
    %c24_i32 = arith.constant 24 : i32
    %c0_i32_119 = arith.constant 0 : i32
    %176 = tpu.memref_slice %arg7[%c24_i32, %c0_i32_119] : memref<32x32xf32, #tpu.memory_space<vmem>> -> memref<1x32xf32, #tpu.memory_space<vmem>>
    %177 = tpu.memref_slice %arg9[%c0_i32_117] : memref<1x!tpu.dma_semaphore, #tpu.memory_space<semaphore_mem>> -> memref<1x!tpu.dma_semaphore, #tpu.memory_space<semaphore_mem>>
    %178 = tpu.memref_squeeze %177 : memref<1x!tpu.dma_semaphore, #tpu.memory_space<semaphore_mem>> -> memref<!tpu.dma_semaphore, #tpu.memory_space<semaphore_mem>>
    tpu.enqueue_dma source(%175 : memref<1x32xf32, #tpu.memory_space<any>>) target(%176 : memref<1x32xf32, #tpu.memory_space<vmem>>) target_semaphore(%178 : memref<!tpu.dma_semaphore, #tpu.memory_space<semaphore_mem>>)
    %c3_i32_120 = arith.constant 3 : i32
    %179 = arith.addi %0, %c3_i32_120 : i32
    %180 = arith.index_cast %179 : i32 to index
    %c1_121 = arith.constant 1 : index
    %181 = memref.load %arg1[%180, %c1_121] : memref<8x8xi32, #tpu.memory_space<smem>>
    %c0_i32_122 = arith.constant 0 : i32
    %c0_i32_123 = arith.constant 0 : i32
    %182 = tpu.memref_slice %arg2[%181, %c0_i32_123] : memref<128x32xf32, #tpu.memory_space<any>> -> memref<1x32xf32, #tpu.memory_space<any>>
    %c25_i32 = arith.constant 25 : i32
    %c0_i32_124 = arith.constant 0 : i32
    %183 = tpu.memref_slice %arg7[%c25_i32, %c0_i32_124] : memref<32x32xf32, #tpu.memory_space<vmem>> -> memref<1x32xf32, #tpu.memory_space<vmem>>
    %184 = tpu.memref_slice %arg9[%c0_i32_122] : memref<1x!tpu.dma_semaphore, #tpu.memory_space<semaphore_mem>> -> memref<1x!tpu.dma_semaphore, #tpu.memory_space<semaphore_mem>>
    %185 = tpu.memref_squeeze %184 : memref<1x!tpu.dma_semaphore, #tpu.memory_space<semaphore_mem>> -> memref<!tpu.dma_semaphore, #tpu.memory_space<semaphore_mem>>
    tpu.enqueue_dma source(%182 : memref<1x32xf32, #tpu.memory_space<any>>) target(%183 : memref<1x32xf32, #tpu.memory_space<vmem>>) target_semaphore(%185 : memref<!tpu.dma_semaphore, #tpu.memory_space<semaphore_mem>>)
    %c3_i32_125 = arith.constant 3 : i32
    %186 = arith.addi %0, %c3_i32_125 : i32
    %187 = arith.index_cast %186 : i32 to index
    %c2_126 = arith.constant 2 : index
    %188 = memref.load %arg1[%187, %c2_126] : memref<8x8xi32, #tpu.memory_space<smem>>
    %c0_i32_127 = arith.constant 0 : i32
    %c0_i32_128 = arith.constant 0 : i32
    %189 = tpu.memref_slice %arg2[%188, %c0_i32_128] : memref<128x32xf32, #tpu.memory_space<any>> -> memref<1x32xf32, #tpu.memory_space<any>>
    %c26_i32 = arith.constant 26 : i32
    %c0_i32_129 = arith.constant 0 : i32
    %190 = tpu.memref_slice %arg7[%c26_i32, %c0_i32_129] : memref<32x32xf32, #tpu.memory_space<vmem>> -> memref<1x32xf32, #tpu.memory_space<vmem>>
    %191 = tpu.memref_slice %arg9[%c0_i32_127] : memref<1x!tpu.dma_semaphore, #tpu.memory_space<semaphore_mem>> -> memref<1x!tpu.dma_semaphore, #tpu.memory_space<semaphore_mem>>
    %192 = tpu.memref_squeeze %191 : memref<1x!tpu.dma_semaphore, #tpu.memory_space<semaphore_mem>> -> memref<!tpu.dma_semaphore, #tpu.memory_space<semaphore_mem>>
    tpu.enqueue_dma source(%189 : memref<1x32xf32, #tpu.memory_space<any>>) target(%190 : memref<1x32xf32, #tpu.memory_space<vmem>>) target_semaphore(%192 : memref<!tpu.dma_semaphore, #tpu.memory_space<semaphore_mem>>)
    %c3_i32_130 = arith.constant 3 : i32
    %193 = arith.addi %0, %c3_i32_130 : i32
    %194 = arith.index_cast %193 : i32 to index
    %c3_131 = arith.constant 3 : index
    %195 = memref.load %arg1[%194, %c3_131] : memref<8x8xi32, #tpu.memory_space<smem>>
    %c0_i32_132 = arith.constant 0 : i32
    %c0_i32_133 = arith.constant 0 : i32
    %196 = tpu.memref_slice %arg2[%195, %c0_i32_133] : memref<128x32xf32, #tpu.memory_space<any>> -> memref<1x32xf32, #tpu.memory_space<any>>
    %c27_i32 = arith.constant 27 : i32
    %c0_i32_134 = arith.constant 0 : i32
    %197 = tpu.memref_slice %arg7[%c27_i32, %c0_i32_134] : memref<32x32xf32, #tpu.memory_space<vmem>> -> memref<1x32xf32, #tpu.memory_space<vmem>>
    %198 = tpu.memref_slice %arg9[%c0_i32_132] : memref<1x!tpu.dma_semaphore, #tpu.memory_space<semaphore_mem>> -> memref<1x!tpu.dma_semaphore, #tpu.memory_space<semaphore_mem>>
    %199 = tpu.memref_squeeze %198 : memref<1x!tpu.dma_semaphore, #tpu.memory_space<semaphore_mem>> -> memref<!tpu.dma_semaphore, #tpu.memory_space<semaphore_mem>>
    tpu.enqueue_dma source(%196 : memref<1x32xf32, #tpu.memory_space<any>>) target(%197 : memref<1x32xf32, #tpu.memory_space<vmem>>) target_semaphore(%199 : memref<!tpu.dma_semaphore, #tpu.memory_space<semaphore_mem>>)
    %c3_i32_135 = arith.constant 3 : i32
    %200 = arith.addi %0, %c3_i32_135 : i32
    %201 = arith.index_cast %200 : i32 to index
    %c4_136 = arith.constant 4 : index
    %202 = memref.load %arg1[%201, %c4_136] : memref<8x8xi32, #tpu.memory_space<smem>>
    %c0_i32_137 = arith.constant 0 : i32
    %c0_i32_138 = arith.constant 0 : i32
    %203 = tpu.memref_slice %arg2[%202, %c0_i32_138] : memref<128x32xf32, #tpu.memory_space<any>> -> memref<1x32xf32, #tpu.memory_space<any>>
    %c28_i32 = arith.constant 28 : i32
    %c0_i32_139 = arith.constant 0 : i32
    %204 = tpu.memref_slice %arg7[%c28_i32, %c0_i32_139] : memref<32x32xf32, #tpu.memory_space<vmem>> -> memref<1x32xf32, #tpu.memory_space<vmem>>
    %205 = tpu.memref_slice %arg9[%c0_i32_137] : memref<1x!tpu.dma_semaphore, #tpu.memory_space<semaphore_mem>> -> memref<1x!tpu.dma_semaphore, #tpu.memory_space<semaphore_mem>>
    %206 = tpu.memref_squeeze %205 : memref<1x!tpu.dma_semaphore, #tpu.memory_space<semaphore_mem>> -> memref<!tpu.dma_semaphore, #tpu.memory_space<semaphore_mem>>
    tpu.enqueue_dma source(%203 : memref<1x32xf32, #tpu.memory_space<any>>) target(%204 : memref<1x32xf32, #tpu.memory_space<vmem>>) target_semaphore(%206 : memref<!tpu.dma_semaphore, #tpu.memory_space<semaphore_mem>>)
    %c3_i32_140 = arith.constant 3 : i32
    %207 = arith.addi %0, %c3_i32_140 : i32
    %208 = arith.index_cast %207 : i32 to index
    %c5_141 = arith.constant 5 : index
    %209 = memref.load %arg1[%208, %c5_141] : memref<8x8xi32, #tpu.memory_space<smem>>
    %c0_i32_142 = arith.constant 0 : i32
    %c0_i32_143 = arith.constant 0 : i32
    %210 = tpu.memref_slice %arg2[%209, %c0_i32_143] : memref<128x32xf32, #tpu.memory_space<any>> -> memref<1x32xf32, #tpu.memory_space<any>>
    %c29_i32 = arith.constant 29 : i32
    %c0_i32_144 = arith.constant 0 : i32
    %211 = tpu.memref_slice %arg7[%c29_i32, %c0_i32_144] : memref<32x32xf32, #tpu.memory_space<vmem>> -> memref<1x32xf32, #tpu.memory_space<vmem>>
    %212 = tpu.memref_slice %arg9[%c0_i32_142] : memref<1x!tpu.dma_semaphore, #tpu.memory_space<semaphore_mem>> -> memref<1x!tpu.dma_semaphore, #tpu.memory_space<semaphore_mem>>
    %213 = tpu.memref_squeeze %212 : memref<1x!tpu.dma_semaphore, #tpu.memory_space<semaphore_mem>> -> memref<!tpu.dma_semaphore, #tpu.memory_space<semaphore_mem>>
    tpu.enqueue_dma source(%210 : memref<1x32xf32, #tpu.memory_space<any>>) target(%211 : memref<1x32xf32, #tpu.memory_space<vmem>>) target_semaphore(%213 : memref<!tpu.dma_semaphore, #tpu.memory_space<semaphore_mem>>)
    %c3_i32_145 = arith.constant 3 : i32
    %214 = arith.addi %0, %c3_i32_145 : i32
    %215 = arith.index_cast %214 : i32 to index
    %c6_146 = arith.constant 6 : index
    %216 = memref.load %arg1[%215, %c6_146] : memref<8x8xi32, #tpu.memory_space<smem>>
    %c0_i32_147 = arith.constant 0 : i32
    %c0_i32_148 = arith.constant 0 : i32
    %217 = tpu.memref_slice %arg2[%216, %c0_i32_148] : memref<128x32xf32, #tpu.memory_space<any>> -> memref<1x32xf32, #tpu.memory_space<any>>
    %c30_i32 = arith.constant 30 : i32
    %c0_i32_149 = arith.constant 0 : i32
    %218 = tpu.memref_slice %arg7[%c30_i32, %c0_i32_149] : memref<32x32xf32, #tpu.memory_space<vmem>> -> memref<1x32xf32, #tpu.memory_space<vmem>>
    %219 = tpu.memref_slice %arg9[%c0_i32_147] : memref<1x!tpu.dma_semaphore, #tpu.memory_space<semaphore_mem>> -> memref<1x!tpu.dma_semaphore, #tpu.memory_space<semaphore_mem>>
    %220 = tpu.memref_squeeze %219 : memref<1x!tpu.dma_semaphore, #tpu.memory_space<semaphore_mem>> -> memref<!tpu.dma_semaphore, #tpu.memory_space<semaphore_mem>>
    tpu.enqueue_dma source(%217 : memref<1x32xf32, #tpu.memory_space<any>>) target(%218 : memref<1x32xf32, #tpu.memory_space<vmem>>) target_semaphore(%220 : memref<!tpu.dma_semaphore, #tpu.memory_space<semaphore_mem>>)
    %c3_i32_150 = arith.constant 3 : i32
    %221 = arith.addi %0, %c3_i32_150 : i32
    %222 = arith.index_cast %221 : i32 to index
    %c7_151 = arith.constant 7 : index
    %223 = memref.load %arg1[%222, %c7_151] : memref<8x8xi32, #tpu.memory_space<smem>>
    %c0_i32_152 = arith.constant 0 : i32
    %c0_i32_153 = arith.constant 0 : i32
    %224 = tpu.memref_slice %arg2[%223, %c0_i32_153] : memref<128x32xf32, #tpu.memory_space<any>> -> memref<1x32xf32, #tpu.memory_space<any>>
    %c31_i32 = arith.constant 31 : i32
    %c0_i32_154 = arith.constant 0 : i32
    %225 = tpu.memref_slice %arg7[%c31_i32, %c0_i32_154] : memref<32x32xf32, #tpu.memory_space<vmem>> -> memref<1x32xf32, #tpu.memory_space<vmem>>
    %226 = tpu.memref_slice %arg9[%c0_i32_152] : memref<1x!tpu.dma_semaphore, #tpu.memory_space<semaphore_mem>> -> memref<1x!tpu.dma_semaphore, #tpu.memory_space<semaphore_mem>>
    %227 = tpu.memref_squeeze %226 : memref<1x!tpu.dma_semaphore, #tpu.memory_space<semaphore_mem>> -> memref<!tpu.dma_semaphore, #tpu.memory_space<semaphore_mem>>
    tpu.enqueue_dma source(%224 : memref<1x32xf32, #tpu.memory_space<any>>) target(%225 : memref<1x32xf32, #tpu.memory_space<vmem>>) target_semaphore(%227 : memref<!tpu.dma_semaphore, #tpu.memory_space<semaphore_mem>>)
    %c0_i32_155 = arith.constant 0 : i32
    %c0_i32_156 = arith.constant 0 : i32
    %228 = tpu.memref_slice %arg2[%6, %c0_i32_156] : memref<128x32xf32, #tpu.memory_space<any>> -> memref<1x32xf32, #tpu.memory_space<any>>
    %c0_i32_157 = arith.constant 0 : i32
    %c0_i32_158 = arith.constant 0 : i32
    %229 = tpu.memref_slice %arg7[%c0_i32_157, %c0_i32_158] : memref<32x32xf32, #tpu.memory_space<vmem>> -> memref<1x32xf32, #tpu.memory_space<vmem>>
    %230 = tpu.memref_slice %arg9[%c0_i32_155] : memref<1x!tpu.dma_semaphore, #tpu.memory_space<semaphore_mem>> -> memref<1x!tpu.dma_semaphore, #tpu.memory_space<semaphore_mem>>
    %231 = tpu.memref_squeeze %230 : memref<1x!tpu.dma_semaphore, #tpu.memory_space<semaphore_mem>> -> memref<!tpu.dma_semaphore, #tpu.memory_space<semaphore_mem>>
    tpu.wait_dma2 semaphore(%231 : memref<!tpu.dma_semaphore, #tpu.memory_space<semaphore_mem>>) src(%228 : memref<1x32xf32, #tpu.memory_space<any>>) dst(%229 : memref<1x32xf32, #tpu.memory_space<vmem>>)
    %c0_i32_159 = arith.constant 0 : i32
    %c0_i32_160 = arith.constant 0 : i32
    %232 = tpu.memref_slice %arg2[%13, %c0_i32_160] : memref<128x32xf32, #tpu.memory_space<any>> -> memref<1x32xf32, #tpu.memory_space<any>>
    %c1_i32_161 = arith.constant 1 : i32
    %c0_i32_162 = arith.constant 0 : i32
    %233 = tpu.memref_slice %arg7[%c1_i32_161, %c0_i32_162] : memref<32x32xf32, #tpu.memory_space<vmem>> -> memref<1x32xf32, #tpu.memory_space<vmem>>
    %234 = tpu.memref_slice %arg9[%c0_i32_159] : memref<1x!tpu.dma_semaphore, #tpu.memory_space<semaphore_mem>> -> memref<1x!tpu.dma_semaphore, #tpu.memory_space<semaphore_mem>>
    %235 = tpu.memref_squeeze %234 : memref<1x!tpu.dma_semaphore, #tpu.memory_space<semaphore_mem>> -> memref<!tpu.dma_semaphore, #tpu.memory_space<semaphore_mem>>
    tpu.wait_dma2 semaphore(%235 : memref<!tpu.dma_semaphore, #tpu.memory_space<semaphore_mem>>) src(%232 : memref<1x32xf32, #tpu.memory_space<any>>) dst(%233 : memref<1x32xf32, #tpu.memory_space<vmem>>)
    %c0_i32_163 = arith.constant 0 : i32
    %c0_i32_164 = arith.constant 0 : i32
    %236 = tpu.memref_slice %arg2[%20, %c0_i32_164] : memref<128x32xf32, #tpu.memory_space<any>> -> memref<1x32xf32, #tpu.memory_space<any>>
    %c2_i32_165 = arith.constant 2 : i32
    %c0_i32_166 = arith.constant 0 : i32
    %237 = tpu.memref_slice %arg7[%c2_i32_165, %c0_i32_166] : memref<32x32xf32, #tpu.memory_space<vmem>> -> memref<1x32xf32, #tpu.memory_space<vmem>>
    %238 = tpu.memref_slice %arg9[%c0_i32_163] : memref<1x!tpu.dma_semaphore, #tpu.memory_space<semaphore_mem>> -> memref<1x!tpu.dma_semaphore, #tpu.memory_space<semaphore_mem>>
    %239 = tpu.memref_squeeze %238 : memref<1x!tpu.dma_semaphore, #tpu.memory_space<semaphore_mem>> -> memref<!tpu.dma_semaphore, #tpu.memory_space<semaphore_mem>>
    tpu.wait_dma2 semaphore(%239 : memref<!tpu.dma_semaphore, #tpu.memory_space<semaphore_mem>>) src(%236 : memref<1x32xf32, #tpu.memory_space<any>>) dst(%237 : memref<1x32xf32, #tpu.memory_space<vmem>>)
    %c0_i32_167 = arith.constant 0 : i32
    %c0_i32_168 = arith.constant 0 : i32
    %240 = tpu.memref_slice %arg2[%27, %c0_i32_168] : memref<128x32xf32, #tpu.memory_space<any>> -> memref<1x32xf32, #tpu.memory_space<any>>
    %c3_i32_169 = arith.constant 3 : i32
    %c0_i32_170 = arith.constant 0 : i32
    %241 = tpu.memref_slice %arg7[%c3_i32_169, %c0_i32_170] : memref<32x32xf32, #tpu.memory_space<vmem>> -> memref<1x32xf32, #tpu.memory_space<vmem>>
    %242 = tpu.memref_slice %arg9[%c0_i32_167] : memref<1x!tpu.dma_semaphore, #tpu.memory_space<semaphore_mem>> -> memref<1x!tpu.dma_semaphore, #tpu.memory_space<semaphore_mem>>
    %243 = tpu.memref_squeeze %242 : memref<1x!tpu.dma_semaphore, #tpu.memory_space<semaphore_mem>> -> memref<!tpu.dma_semaphore, #tpu.memory_space<semaphore_mem>>
    tpu.wait_dma2 semaphore(%243 : memref<!tpu.dma_semaphore, #tpu.memory_space<semaphore_mem>>) src(%240 : memref<1x32xf32, #tpu.memory_space<any>>) dst(%241 : memref<1x32xf32, #tpu.memory_space<vmem>>)
    %c0_i32_171 = arith.constant 0 : i32
    %c0_i32_172 = arith.constant 0 : i32
    %244 = tpu.memref_slice %arg2[%34, %c0_i32_172] : memref<128x32xf32, #tpu.memory_space<any>> -> memref<1x32xf32, #tpu.memory_space<any>>
    %c4_i32_173 = arith.constant 4 : i32
    %c0_i32_174 = arith.constant 0 : i32
    %245 = tpu.memref_slice %arg7[%c4_i32_173, %c0_i32_174] : memref<32x32xf32, #tpu.memory_space<vmem>> -> memref<1x32xf32, #tpu.memory_space<vmem>>
    %246 = tpu.memref_slice %arg9[%c0_i32_171] : memref<1x!tpu.dma_semaphore, #tpu.memory_space<semaphore_mem>> -> memref<1x!tpu.dma_semaphore, #tpu.memory_space<semaphore_mem>>
    %247 = tpu.memref_squeeze %246 : memref<1x!tpu.dma_semaphore, #tpu.memory_space<semaphore_mem>> -> memref<!tpu.dma_semaphore, #tpu.memory_space<semaphore_mem>>
    tpu.wait_dma2 semaphore(%247 : memref<!tpu.dma_semaphore, #tpu.memory_space<semaphore_mem>>) src(%244 : memref<1x32xf32, #tpu.memory_space<any>>) dst(%245 : memref<1x32xf32, #tpu.memory_space<vmem>>)
    %c0_i32_175 = arith.constant 0 : i32
    %c0_i32_176 = arith.constant 0 : i32
    %248 = tpu.memref_slice %arg2[%41, %c0_i32_176] : memref<128x32xf32, #tpu.memory_space<any>> -> memref<1x32xf32, #tpu.memory_space<any>>
    %c5_i32_177 = arith.constant 5 : i32
    %c0_i32_178 = arith.constant 0 : i32
    %249 = tpu.memref_slice %arg7[%c5_i32_177, %c0_i32_178] : memref<32x32xf32, #tpu.memory_space<vmem>> -> memref<1x32xf32, #tpu.memory_space<vmem>>
    %250 = tpu.memref_slice %arg9[%c0_i32_175] : memref<1x!tpu.dma_semaphore, #tpu.memory_space<semaphore_mem>> -> memref<1x!tpu.dma_semaphore, #tpu.memory_space<semaphore_mem>>
    %251 = tpu.memref_squeeze %250 : memref<1x!tpu.dma_semaphore, #tpu.memory_space<semaphore_mem>> -> memref<!tpu.dma_semaphore, #tpu.memory_space<semaphore_mem>>
    tpu.wait_dma2 semaphore(%251 : memref<!tpu.dma_semaphore, #tpu.memory_space<semaphore_mem>>) src(%248 : memref<1x32xf32, #tpu.memory_space<any>>) dst(%249 : memref<1x32xf32, #tpu.memory_space<vmem>>)
    %c0_i32_179 = arith.constant 0 : i32
    %c0_i32_180 = arith.constant 0 : i32
    %252 = tpu.memref_slice %arg2[%48, %c0_i32_180] : memref<128x32xf32, #tpu.memory_space<any>> -> memref<1x32xf32, #tpu.memory_space<any>>
    %c6_i32_181 = arith.constant 6 : i32
    %c0_i32_182 = arith.constant 0 : i32
    %253 = tpu.memref_slice %arg7[%c6_i32_181, %c0_i32_182] : memref<32x32xf32, #tpu.memory_space<vmem>> -> memref<1x32xf32, #tpu.memory_space<vmem>>
    %254 = tpu.memref_slice %arg9[%c0_i32_179] : memref<1x!tpu.dma_semaphore, #tpu.memory_space<semaphore_mem>> -> memref<1x!tpu.dma_semaphore, #tpu.memory_space<semaphore_mem>>
    %255 = tpu.memref_squeeze %254 : memref<1x!tpu.dma_semaphore, #tpu.memory_space<semaphore_mem>> -> memref<!tpu.dma_semaphore, #tpu.memory_space<semaphore_mem>>
    tpu.wait_dma2 semaphore(%255 : memref<!tpu.dma_semaphore, #tpu.memory_space<semaphore_mem>>) src(%252 : memref<1x32xf32, #tpu.memory_space<any>>) dst(%253 : memref<1x32xf32, #tpu.memory_space<vmem>>)
    %c0_i32_183 = arith.constant 0 : i32
    %c0_i32_184 = arith.constant 0 : i32
    %256 = tpu.memref_slice %arg2[%55, %c0_i32_184] : memref<128x32xf32, #tpu.memory_space<any>> -> memref<1x32xf32, #tpu.memory_space<any>>
    %c7_i32_185 = arith.constant 7 : i32
    %c0_i32_186 = arith.constant 0 : i32
    %257 = tpu.memref_slice %arg7[%c7_i32_185, %c0_i32_186] : memref<32x32xf32, #tpu.memory_space<vmem>> -> memref<1x32xf32, #tpu.memory_space<vmem>>
    %258 = tpu.memref_slice %arg9[%c0_i32_183] : memref<1x!tpu.dma_semaphore, #tpu.memory_space<semaphore_mem>> -> memref<1x!tpu.dma_semaphore, #tpu.memory_space<semaphore_mem>>
    %259 = tpu.memref_squeeze %258 : memref<1x!tpu.dma_semaphore, #tpu.memory_space<semaphore_mem>> -> memref<!tpu.dma_semaphore, #tpu.memory_space<semaphore_mem>>
    tpu.wait_dma2 semaphore(%259 : memref<!tpu.dma_semaphore, #tpu.memory_space<semaphore_mem>>) src(%256 : memref<1x32xf32, #tpu.memory_space<any>>) dst(%257 : memref<1x32xf32, #tpu.memory_space<vmem>>)
    %c0_i32_187 = arith.constant 0 : i32
    %c0_i32_188 = arith.constant 0 : i32
    %260 = tpu.memref_slice %arg2[%62, %c0_i32_188] : memref<128x32xf32, #tpu.memory_space<any>> -> memref<1x32xf32, #tpu.memory_space<any>>
    %c8_i32_189 = arith.constant 8 : i32
    %c0_i32_190 = arith.constant 0 : i32
    %261 = tpu.memref_slice %arg7[%c8_i32_189, %c0_i32_190] : memref<32x32xf32, #tpu.memory_space<vmem>> -> memref<1x32xf32, #tpu.memory_space<vmem>>
    %262 = tpu.memref_slice %arg9[%c0_i32_187] : memref<1x!tpu.dma_semaphore, #tpu.memory_space<semaphore_mem>> -> memref<1x!tpu.dma_semaphore, #tpu.memory_space<semaphore_mem>>
    %263 = tpu.memref_squeeze %262 : memref<1x!tpu.dma_semaphore, #tpu.memory_space<semaphore_mem>> -> memref<!tpu.dma_semaphore, #tpu.memory_space<semaphore_mem>>
    tpu.wait_dma2 semaphore(%263 : memref<!tpu.dma_semaphore, #tpu.memory_space<semaphore_mem>>) src(%260 : memref<1x32xf32, #tpu.memory_space<any>>) dst(%261 : memref<1x32xf32, #tpu.memory_space<vmem>>)
    %c0_i32_191 = arith.constant 0 : i32
    %c0_i32_192 = arith.constant 0 : i32
    %264 = tpu.memref_slice %arg2[%69, %c0_i32_192] : memref<128x32xf32, #tpu.memory_space<any>> -> memref<1x32xf32, #tpu.memory_space<any>>
    %c9_i32_193 = arith.constant 9 : i32
    %c0_i32_194 = arith.constant 0 : i32
    %265 = tpu.memref_slice %arg7[%c9_i32_193, %c0_i32_194] : memref<32x32xf32, #tpu.memory_space<vmem>> -> memref<1x32xf32, #tpu.memory_space<vmem>>
    %266 = tpu.memref_slice %arg9[%c0_i32_191] : memref<1x!tpu.dma_semaphore, #tpu.memory_space<semaphore_mem>> -> memref<1x!tpu.dma_semaphore, #tpu.memory_space<semaphore_mem>>
    %267 = tpu.memref_squeeze %266 : memref<1x!tpu.dma_semaphore, #tpu.memory_space<semaphore_mem>> -> memref<!tpu.dma_semaphore, #tpu.memory_space<semaphore_mem>>
    tpu.wait_dma2 semaphore(%267 : memref<!tpu.dma_semaphore, #tpu.memory_space<semaphore_mem>>) src(%264 : memref<1x32xf32, #tpu.memory_space<any>>) dst(%265 : memref<1x32xf32, #tpu.memory_space<vmem>>)
    %c0_i32_195 = arith.constant 0 : i32
    %c0_i32_196 = arith.constant 0 : i32
    %268 = tpu.memref_slice %arg2[%76, %c0_i32_196] : memref<128x32xf32, #tpu.memory_space<any>> -> memref<1x32xf32, #tpu.memory_space<any>>
    %c10_i32_197 = arith.constant 10 : i32
    %c0_i32_198 = arith.constant 0 : i32
    %269 = tpu.memref_slice %arg7[%c10_i32_197, %c0_i32_198] : memref<32x32xf32, #tpu.memory_space<vmem>> -> memref<1x32xf32, #tpu.memory_space<vmem>>
    %270 = tpu.memref_slice %arg9[%c0_i32_195] : memref<1x!tpu.dma_semaphore, #tpu.memory_space<semaphore_mem>> -> memref<1x!tpu.dma_semaphore, #tpu.memory_space<semaphore_mem>>
    %271 = tpu.memref_squeeze %270 : memref<1x!tpu.dma_semaphore, #tpu.memory_space<semaphore_mem>> -> memref<!tpu.dma_semaphore, #tpu.memory_space<semaphore_mem>>
    tpu.wait_dma2 semaphore(%271 : memref<!tpu.dma_semaphore, #tpu.memory_space<semaphore_mem>>) src(%268 : memref<1x32xf32, #tpu.memory_space<any>>) dst(%269 : memref<1x32xf32, #tpu.memory_space<vmem>>)
    %c0_i32_199 = arith.constant 0 : i32
    %c0_i32_200 = arith.constant 0 : i32
    %272 = tpu.memref_slice %arg2[%83, %c0_i32_200] : memref<128x32xf32, #tpu.memory_space<any>> -> memref<1x32xf32, #tpu.memory_space<any>>
    %c11_i32_201 = arith.constant 11 : i32
    %c0_i32_202 = arith.constant 0 : i32
    %273 = tpu.memref_slice %arg7[%c11_i32_201, %c0_i32_202] : memref<32x32xf32, #tpu.memory_space<vmem>> -> memref<1x32xf32, #tpu.memory_space<vmem>>
    %274 = tpu.memref_slice %arg9[%c0_i32_199] : memref<1x!tpu.dma_semaphore, #tpu.memory_space<semaphore_mem>> -> memref<1x!tpu.dma_semaphore, #tpu.memory_space<semaphore_mem>>
    %275 = tpu.memref_squeeze %274 : memref<1x!tpu.dma_semaphore, #tpu.memory_space<semaphore_mem>> -> memref<!tpu.dma_semaphore, #tpu.memory_space<semaphore_mem>>
    tpu.wait_dma2 semaphore(%275 : memref<!tpu.dma_semaphore, #tpu.memory_space<semaphore_mem>>) src(%272 : memref<1x32xf32, #tpu.memory_space<any>>) dst(%273 : memref<1x32xf32, #tpu.memory_space<vmem>>)
    %c0_i32_203 = arith.constant 0 : i32
    %c0_i32_204 = arith.constant 0 : i32
    %276 = tpu.memref_slice %arg2[%90, %c0_i32_204] : memref<128x32xf32, #tpu.memory_space<any>> -> memref<1x32xf32, #tpu.memory_space<any>>
    %c12_i32_205 = arith.constant 12 : i32
    %c0_i32_206 = arith.constant 0 : i32
    %277 = tpu.memref_slice %arg7[%c12_i32_205, %c0_i32_206] : memref<32x32xf32, #tpu.memory_space<vmem>> -> memref<1x32xf32, #tpu.memory_space<vmem>>
    %278 = tpu.memref_slice %arg9[%c0_i32_203] : memref<1x!tpu.dma_semaphore, #tpu.memory_space<semaphore_mem>> -> memref<1x!tpu.dma_semaphore, #tpu.memory_space<semaphore_mem>>
    %279 = tpu.memref_squeeze %278 : memref<1x!tpu.dma_semaphore, #tpu.memory_space<semaphore_mem>> -> memref<!tpu.dma_semaphore, #tpu.memory_space<semaphore_mem>>
    tpu.wait_dma2 semaphore(%279 : memref<!tpu.dma_semaphore, #tpu.memory_space<semaphore_mem>>) src(%276 : memref<1x32xf32, #tpu.memory_space<any>>) dst(%277 : memref<1x32xf32, #tpu.memory_space<vmem>>)
    %c0_i32_207 = arith.constant 0 : i32
    %c0_i32_208 = arith.constant 0 : i32
    %280 = tpu.memref_slice %arg2[%97, %c0_i32_208] : memref<128x32xf32, #tpu.memory_space<any>> -> memref<1x32xf32, #tpu.memory_space<any>>
    %c13_i32_209 = arith.constant 13 : i32
    %c0_i32_210 = arith.constant 0 : i32
    %281 = tpu.memref_slice %arg7[%c13_i32_209, %c0_i32_210] : memref<32x32xf32, #tpu.memory_space<vmem>> -> memref<1x32xf32, #tpu.memory_space<vmem>>
    %282 = tpu.memref_slice %arg9[%c0_i32_207] : memref<1x!tpu.dma_semaphore, #tpu.memory_space<semaphore_mem>> -> memref<1x!tpu.dma_semaphore, #tpu.memory_space<semaphore_mem>>
    %283 = tpu.memref_squeeze %282 : memref<1x!tpu.dma_semaphore, #tpu.memory_space<semaphore_mem>> -> memref<!tpu.dma_semaphore, #tpu.memory_space<semaphore_mem>>
    tpu.wait_dma2 semaphore(%283 : memref<!tpu.dma_semaphore, #tpu.memory_space<semaphore_mem>>) src(%280 : memref<1x32xf32, #tpu.memory_space<any>>) dst(%281 : memref<1x32xf32, #tpu.memory_space<vmem>>)
    %c0_i32_211 = arith.constant 0 : i32
    %c0_i32_212 = arith.constant 0 : i32
    %284 = tpu.memref_slice %arg2[%104, %c0_i32_212] : memref<128x32xf32, #tpu.memory_space<any>> -> memref<1x32xf32, #tpu.memory_space<any>>
    %c14_i32_213 = arith.constant 14 : i32
    %c0_i32_214 = arith.constant 0 : i32
    %285 = tpu.memref_slice %arg7[%c14_i32_213, %c0_i32_214] : memref<32x32xf32, #tpu.memory_space<vmem>> -> memref<1x32xf32, #tpu.memory_space<vmem>>
    %286 = tpu.memref_slice %arg9[%c0_i32_211] : memref<1x!tpu.dma_semaphore, #tpu.memory_space<semaphore_mem>> -> memref<1x!tpu.dma_semaphore, #tpu.memory_space<semaphore_mem>>
    %287 = tpu.memref_squeeze %286 : memref<1x!tpu.dma_semaphore, #tpu.memory_space<semaphore_mem>> -> memref<!tpu.dma_semaphore, #tpu.memory_space<semaphore_mem>>
    tpu.wait_dma2 semaphore(%287 : memref<!tpu.dma_semaphore, #tpu.memory_space<semaphore_mem>>) src(%284 : memref<1x32xf32, #tpu.memory_space<any>>) dst(%285 : memref<1x32xf32, #tpu.memory_space<vmem>>)
    %c0_i32_215 = arith.constant 0 : i32
    %c0_i32_216 = arith.constant 0 : i32
    %288 = tpu.memref_slice %arg2[%111, %c0_i32_216] : memref<128x32xf32, #tpu.memory_space<any>> -> memref<1x32xf32, #tpu.memory_space<any>>
    %c15_i32_217 = arith.constant 15 : i32
    %c0_i32_218 = arith.constant 0 : i32
    %289 = tpu.memref_slice %arg7[%c15_i32_217, %c0_i32_218] : memref<32x32xf32, #tpu.memory_space<vmem>> -> memref<1x32xf32, #tpu.memory_space<vmem>>
    %290 = tpu.memref_slice %arg9[%c0_i32_215] : memref<1x!tpu.dma_semaphore, #tpu.memory_space<semaphore_mem>> -> memref<1x!tpu.dma_semaphore, #tpu.memory_space<semaphore_mem>>
    %291 = tpu.memref_squeeze %290 : memref<1x!tpu.dma_semaphore, #tpu.memory_space<semaphore_mem>> -> memref<!tpu.dma_semaphore, #tpu.memory_space<semaphore_mem>>
    tpu.wait_dma2 semaphore(%291 : memref<!tpu.dma_semaphore, #tpu.memory_space<semaphore_mem>>) src(%288 : memref<1x32xf32, #tpu.memory_space<any>>) dst(%289 : memref<1x32xf32, #tpu.memory_space<vmem>>)
    %c0_i32_219 = arith.constant 0 : i32
    %c0_i32_220 = arith.constant 0 : i32
    %292 = tpu.memref_slice %arg2[%118, %c0_i32_220] : memref<128x32xf32, #tpu.memory_space<any>> -> memref<1x32xf32, #tpu.memory_space<any>>
    %c16_i32_221 = arith.constant 16 : i32
    %c0_i32_222 = arith.constant 0 : i32
    %293 = tpu.memref_slice %arg7[%c16_i32_221, %c0_i32_222] : memref<32x32xf32, #tpu.memory_space<vmem>> -> memref<1x32xf32, #tpu.memory_space<vmem>>
    %294 = tpu.memref_slice %arg9[%c0_i32_219] : memref<1x!tpu.dma_semaphore, #tpu.memory_space<semaphore_mem>> -> memref<1x!tpu.dma_semaphore, #tpu.memory_space<semaphore_mem>>
    %295 = tpu.memref_squeeze %294 : memref<1x!tpu.dma_semaphore, #tpu.memory_space<semaphore_mem>> -> memref<!tpu.dma_semaphore, #tpu.memory_space<semaphore_mem>>
    tpu.wait_dma2 semaphore(%295 : memref<!tpu.dma_semaphore, #tpu.memory_space<semaphore_mem>>) src(%292 : memref<1x32xf32, #tpu.memory_space<any>>) dst(%293 : memref<1x32xf32, #tpu.memory_space<vmem>>)
    %c0_i32_223 = arith.constant 0 : i32
    %c0_i32_224 = arith.constant 0 : i32
    %296 = tpu.memref_slice %arg2[%125, %c0_i32_224] : memref<128x32xf32, #tpu.memory_space<any>> -> memref<1x32xf32, #tpu.memory_space<any>>
    %c17_i32_225 = arith.constant 17 : i32
    %c0_i32_226 = arith.constant 0 : i32
    %297 = tpu.memref_slice %arg7[%c17_i32_225, %c0_i32_226] : memref<32x32xf32, #tpu.memory_space<vmem>> -> memref<1x32xf32, #tpu.memory_space<vmem>>
    %298 = tpu.memref_slice %arg9[%c0_i32_223] : memref<1x!tpu.dma_semaphore, #tpu.memory_space<semaphore_mem>> -> memref<1x!tpu.dma_semaphore, #tpu.memory_space<semaphore_mem>>
    %299 = tpu.memref_squeeze %298 : memref<1x!tpu.dma_semaphore, #tpu.memory_space<semaphore_mem>> -> memref<!tpu.dma_semaphore, #tpu.memory_space<semaphore_mem>>
    tpu.wait_dma2 semaphore(%299 : memref<!tpu.dma_semaphore, #tpu.memory_space<semaphore_mem>>) src(%296 : memref<1x32xf32, #tpu.memory_space<any>>) dst(%297 : memref<1x32xf32, #tpu.memory_space<vmem>>)
    %c0_i32_227 = arith.constant 0 : i32
    %c0_i32_228 = arith.constant 0 : i32
    %300 = tpu.memref_slice %arg2[%132, %c0_i32_228] : memref<128x32xf32, #tpu.memory_space<any>> -> memref<1x32xf32, #tpu.memory_space<any>>
    %c18_i32_229 = arith.constant 18 : i32
    %c0_i32_230 = arith.constant 0 : i32
    %301 = tpu.memref_slice %arg7[%c18_i32_229, %c0_i32_230] : memref<32x32xf32, #tpu.memory_space<vmem>> -> memref<1x32xf32, #tpu.memory_space<vmem>>
    %302 = tpu.memref_slice %arg9[%c0_i32_227] : memref<1x!tpu.dma_semaphore, #tpu.memory_space<semaphore_mem>> -> memref<1x!tpu.dma_semaphore, #tpu.memory_space<semaphore_mem>>
    %303 = tpu.memref_squeeze %302 : memref<1x!tpu.dma_semaphore, #tpu.memory_space<semaphore_mem>> -> memref<!tpu.dma_semaphore, #tpu.memory_space<semaphore_mem>>
    tpu.wait_dma2 semaphore(%303 : memref<!tpu.dma_semaphore, #tpu.memory_space<semaphore_mem>>) src(%300 : memref<1x32xf32, #tpu.memory_space<any>>) dst(%301 : memref<1x32xf32, #tpu.memory_space<vmem>>)
    %c0_i32_231 = arith.constant 0 : i32
    %c0_i32_232 = arith.constant 0 : i32
    %304 = tpu.memref_slice %arg2[%139, %c0_i32_232] : memref<128x32xf32, #tpu.memory_space<any>> -> memref<1x32xf32, #tpu.memory_space<any>>
    %c19_i32_233 = arith.constant 19 : i32
    %c0_i32_234 = arith.constant 0 : i32
    %305 = tpu.memref_slice %arg7[%c19_i32_233, %c0_i32_234] : memref<32x32xf32, #tpu.memory_space<vmem>> -> memref<1x32xf32, #tpu.memory_space<vmem>>
    %306 = tpu.memref_slice %arg9[%c0_i32_231] : memref<1x!tpu.dma_semaphore, #tpu.memory_space<semaphore_mem>> -> memref<1x!tpu.dma_semaphore, #tpu.memory_space<semaphore_mem>>
    %307 = tpu.memref_squeeze %306 : memref<1x!tpu.dma_semaphore, #tpu.memory_space<semaphore_mem>> -> memref<!tpu.dma_semaphore, #tpu.memory_space<semaphore_mem>>
    tpu.wait_dma2 semaphore(%307 : memref<!tpu.dma_semaphore, #tpu.memory_space<semaphore_mem>>) src(%304 : memref<1x32xf32, #tpu.memory_space<any>>) dst(%305 : memref<1x32xf32, #tpu.memory_space<vmem>>)
    %c0_i32_235 = arith.constant 0 : i32
    %c0_i32_236 = arith.constant 0 : i32
    %308 = tpu.memref_slice %arg2[%146, %c0_i32_236] : memref<128x32xf32, #tpu.memory_space<any>> -> memref<1x32xf32, #tpu.memory_space<any>>
    %c20_i32_237 = arith.constant 20 : i32
    %c0_i32_238 = arith.constant 0 : i32
    %309 = tpu.memref_slice %arg7[%c20_i32_237, %c0_i32_238] : memref<32x32xf32, #tpu.memory_space<vmem>> -> memref<1x32xf32, #tpu.memory_space<vmem>>
    %310 = tpu.memref_slice %arg9[%c0_i32_235] : memref<1x!tpu.dma_semaphore, #tpu.memory_space<semaphore_mem>> -> memref<1x!tpu.dma_semaphore, #tpu.memory_space<semaphore_mem>>
    %311 = tpu.memref_squeeze %310 : memref<1x!tpu.dma_semaphore, #tpu.memory_space<semaphore_mem>> -> memref<!tpu.dma_semaphore, #tpu.memory_space<semaphore_mem>>
    tpu.wait_dma2 semaphore(%311 : memref<!tpu.dma_semaphore, #tpu.memory_space<semaphore_mem>>) src(%308 : memref<1x32xf32, #tpu.memory_space<any>>) dst(%309 : memref<1x32xf32, #tpu.memory_space<vmem>>)
    %c0_i32_239 = arith.constant 0 : i32
    %c0_i32_240 = arith.constant 0 : i32
    %312 = tpu.memref_slice %arg2[%153, %c0_i32_240] : memref<128x32xf32, #tpu.memory_space<any>> -> memref<1x32xf32, #tpu.memory_space<any>>
    %c21_i32_241 = arith.constant 21 : i32
    %c0_i32_242 = arith.constant 0 : i32
    %313 = tpu.memref_slice %arg7[%c21_i32_241, %c0_i32_242] : memref<32x32xf32, #tpu.memory_space<vmem>> -> memref<1x32xf32, #tpu.memory_space<vmem>>
    %314 = tpu.memref_slice %arg9[%c0_i32_239] : memref<1x!tpu.dma_semaphore, #tpu.memory_space<semaphore_mem>> -> memref<1x!tpu.dma_semaphore, #tpu.memory_space<semaphore_mem>>
    %315 = tpu.memref_squeeze %314 : memref<1x!tpu.dma_semaphore, #tpu.memory_space<semaphore_mem>> -> memref<!tpu.dma_semaphore, #tpu.memory_space<semaphore_mem>>
    tpu.wait_dma2 semaphore(%315 : memref<!tpu.dma_semaphore, #tpu.memory_space<semaphore_mem>>) src(%312 : memref<1x32xf32, #tpu.memory_space<any>>) dst(%313 : memref<1x32xf32, #tpu.memory_space<vmem>>)
    %c0_i32_243 = arith.constant 0 : i32
    %c0_i32_244 = arith.constant 0 : i32
    %316 = tpu.memref_slice %arg2[%160, %c0_i32_244] : memref<128x32xf32, #tpu.memory_space<any>> -> memref<1x32xf32, #tpu.memory_space<any>>
    %c22_i32_245 = arith.constant 22 : i32
    %c0_i32_246 = arith.constant 0 : i32
    %317 = tpu.memref_slice %arg7[%c22_i32_245, %c0_i32_246] : memref<32x32xf32, #tpu.memory_space<vmem>> -> memref<1x32xf32, #tpu.memory_space<vmem>>
    %318 = tpu.memref_slice %arg9[%c0_i32_243] : memref<1x!tpu.dma_semaphore, #tpu.memory_space<semaphore_mem>> -> memref<1x!tpu.dma_semaphore, #tpu.memory_space<semaphore_mem>>
    %319 = tpu.memref_squeeze %318 : memref<1x!tpu.dma_semaphore, #tpu.memory_space<semaphore_mem>> -> memref<!tpu.dma_semaphore, #tpu.memory_space<semaphore_mem>>
    tpu.wait_dma2 semaphore(%319 : memref<!tpu.dma_semaphore, #tpu.memory_space<semaphore_mem>>) src(%316 : memref<1x32xf32, #tpu.memory_space<any>>) dst(%317 : memref<1x32xf32, #tpu.memory_space<vmem>>)
    %c0_i32_247 = arith.constant 0 : i32
    %c0_i32_248 = arith.constant 0 : i32
    %320 = tpu.memref_slice %arg2[%167, %c0_i32_248] : memref<128x32xf32, #tpu.memory_space<any>> -> memref<1x32xf32, #tpu.memory_space<any>>
    %c23_i32_249 = arith.constant 23 : i32
    %c0_i32_250 = arith.constant 0 : i32
    %321 = tpu.memref_slice %arg7[%c23_i32_249, %c0_i32_250] : memref<32x32xf32, #tpu.memory_space<vmem>> -> memref<1x32xf32, #tpu.memory_space<vmem>>
    %322 = tpu.memref_slice %arg9[%c0_i32_247] : memref<1x!tpu.dma_semaphore, #tpu.memory_space<semaphore_mem>> -> memref<1x!tpu.dma_semaphore, #tpu.memory_space<semaphore_mem>>
    %323 = tpu.memref_squeeze %322 : memref<1x!tpu.dma_semaphore, #tpu.memory_space<semaphore_mem>> -> memref<!tpu.dma_semaphore, #tpu.memory_space<semaphore_mem>>
    tpu.wait_dma2 semaphore(%323 : memref<!tpu.dma_semaphore, #tpu.memory_space<semaphore_mem>>) src(%320 : memref<1x32xf32, #tpu.memory_space<any>>) dst(%321 : memref<1x32xf32, #tpu.memory_space<vmem>>)
    %c0_i32_251 = arith.constant 0 : i32
    %c0_i32_252 = arith.constant 0 : i32
    %324 = tpu.memref_slice %arg2[%174, %c0_i32_252] : memref<128x32xf32, #tpu.memory_space<any>> -> memref<1x32xf32, #tpu.memory_space<any>>
    %c24_i32_253 = arith.constant 24 : i32
    %c0_i32_254 = arith.constant 0 : i32
    %325 = tpu.memref_slice %arg7[%c24_i32_253, %c0_i32_254] : memref<32x32xf32, #tpu.memory_space<vmem>> -> memref<1x32xf32, #tpu.memory_space<vmem>>
    %326 = tpu.memref_slice %arg9[%c0_i32_251] : memref<1x!tpu.dma_semaphore, #tpu.memory_space<semaphore_mem>> -> memref<1x!tpu.dma_semaphore, #tpu.memory_space<semaphore_mem>>
    %327 = tpu.memref_squeeze %326 : memref<1x!tpu.dma_semaphore, #tpu.memory_space<semaphore_mem>> -> memref<!tpu.dma_semaphore, #tpu.memory_space<semaphore_mem>>
    tpu.wait_dma2 semaphore(%327 : memref<!tpu.dma_semaphore, #tpu.memory_space<semaphore_mem>>) src(%324 : memref<1x32xf32, #tpu.memory_space<any>>) dst(%325 : memref<1x32xf32, #tpu.memory_space<vmem>>)
    %c0_i32_255 = arith.constant 0 : i32
    %c0_i32_256 = arith.constant 0 : i32
    %328 = tpu.memref_slice %arg2[%181, %c0_i32_256] : memref<128x32xf32, #tpu.memory_space<any>> -> memref<1x32xf32, #tpu.memory_space<any>>
    %c25_i32_257 = arith.constant 25 : i32
    %c0_i32_258 = arith.constant 0 : i32
    %329 = tpu.memref_slice %arg7[%c25_i32_257, %c0_i32_258] : memref<32x32xf32, #tpu.memory_space<vmem>> -> memref<1x32xf32, #tpu.memory_space<vmem>>
    %330 = tpu.memref_slice %arg9[%c0_i32_255] : memref<1x!tpu.dma_semaphore, #tpu.memory_space<semaphore_mem>> -> memref<1x!tpu.dma_semaphore, #tpu.memory_space<semaphore_mem>>
    %331 = tpu.memref_squeeze %330 : memref<1x!tpu.dma_semaphore, #tpu.memory_space<semaphore_mem>> -> memref<!tpu.dma_semaphore, #tpu.memory_space<semaphore_mem>>
    tpu.wait_dma2 semaphore(%331 : memref<!tpu.dma_semaphore, #tpu.memory_space<semaphore_mem>>) src(%328 : memref<1x32xf32, #tpu.memory_space<any>>) dst(%329 : memref<1x32xf32, #tpu.memory_space<vmem>>)
    %c0_i32_259 = arith.constant 0 : i32
    %c0_i32_260 = arith.constant 0 : i32
    %332 = tpu.memref_slice %arg2[%188, %c0_i32_260] : memref<128x32xf32, #tpu.memory_space<any>> -> memref<1x32xf32, #tpu.memory_space<any>>
    %c26_i32_261 = arith.constant 26 : i32
    %c0_i32_262 = arith.constant 0 : i32
    %333 = tpu.memref_slice %arg7[%c26_i32_261, %c0_i32_262] : memref<32x32xf32, #tpu.memory_space<vmem>> -> memref<1x32xf32, #tpu.memory_space<vmem>>
    %334 = tpu.memref_slice %arg9[%c0_i32_259] : memref<1x!tpu.dma_semaphore, #tpu.memory_space<semaphore_mem>> -> memref<1x!tpu.dma_semaphore, #tpu.memory_space<semaphore_mem>>
    %335 = tpu.memref_squeeze %334 : memref<1x!tpu.dma_semaphore, #tpu.memory_space<semaphore_mem>> -> memref<!tpu.dma_semaphore, #tpu.memory_space<semaphore_mem>>
    tpu.wait_dma2 semaphore(%335 : memref<!tpu.dma_semaphore, #tpu.memory_space<semaphore_mem>>) src(%332 : memref<1x32xf32, #tpu.memory_space<any>>) dst(%333 : memref<1x32xf32, #tpu.memory_space<vmem>>)
    %c0_i32_263 = arith.constant 0 : i32
    %c0_i32_264 = arith.constant 0 : i32
    %336 = tpu.memref_slice %arg2[%195, %c0_i32_264] : memref<128x32xf32, #tpu.memory_space<any>> -> memref<1x32xf32, #tpu.memory_space<any>>
    %c27_i32_265 = arith.constant 27 : i32
    %c0_i32_266 = arith.constant 0 : i32
    %337 = tpu.memref_slice %arg7[%c27_i32_265, %c0_i32_266] : memref<32x32xf32, #tpu.memory_space<vmem>> -> memref<1x32xf32, #tpu.memory_space<vmem>>
    %338 = tpu.memref_slice %arg9[%c0_i32_263] : memref<1x!tpu.dma_semaphore, #tpu.memory_space<semaphore_mem>> -> memref<1x!tpu.dma_semaphore, #tpu.memory_space<semaphore_mem>>
    %339 = tpu.memref_squeeze %338 : memref<1x!tpu.dma_semaphore, #tpu.memory_space<semaphore_mem>> -> memref<!tpu.dma_semaphore, #tpu.memory_space<semaphore_mem>>
    tpu.wait_dma2 semaphore(%339 : memref<!tpu.dma_semaphore, #tpu.memory_space<semaphore_mem>>) src(%336 : memref<1x32xf32, #tpu.memory_space<any>>) dst(%337 : memref<1x32xf32, #tpu.memory_space<vmem>>)
    %c0_i32_267 = arith.constant 0 : i32
    %c0_i32_268 = arith.constant 0 : i32
    %340 = tpu.memref_slice %arg2[%202, %c0_i32_268] : memref<128x32xf32, #tpu.memory_space<any>> -> memref<1x32xf32, #tpu.memory_space<any>>
    %c28_i32_269 = arith.constant 28 : i32
    %c0_i32_270 = arith.constant 0 : i32
    %341 = tpu.memref_slice %arg7[%c28_i32_269, %c0_i32_270] : memref<32x32xf32, #tpu.memory_space<vmem>> -> memref<1x32xf32, #tpu.memory_space<vmem>>
    %342 = tpu.memref_slice %arg9[%c0_i32_267] : memref<1x!tpu.dma_semaphore, #tpu.memory_space<semaphore_mem>> -> memref<1x!tpu.dma_semaphore, #tpu.memory_space<semaphore_mem>>
    %343 = tpu.memref_squeeze %342 : memref<1x!tpu.dma_semaphore, #tpu.memory_space<semaphore_mem>> -> memref<!tpu.dma_semaphore, #tpu.memory_space<semaphore_mem>>
    tpu.wait_dma2 semaphore(%343 : memref<!tpu.dma_semaphore, #tpu.memory_space<semaphore_mem>>) src(%340 : memref<1x32xf32, #tpu.memory_space<any>>) dst(%341 : memref<1x32xf32, #tpu.memory_space<vmem>>)
    %c0_i32_271 = arith.constant 0 : i32
    %c0_i32_272 = arith.constant 0 : i32
    %344 = tpu.memref_slice %arg2[%209, %c0_i32_272] : memref<128x32xf32, #tpu.memory_space<any>> -> memref<1x32xf32, #tpu.memory_space<any>>
    %c29_i32_273 = arith.constant 29 : i32
    %c0_i32_274 = arith.constant 0 : i32
    %345 = tpu.memref_slice %arg7[%c29_i32_273, %c0_i32_274] : memref<32x32xf32, #tpu.memory_space<vmem>> -> memref<1x32xf32, #tpu.memory_space<vmem>>
    %346 = tpu.memref_slice %arg9[%c0_i32_271] : memref<1x!tpu.dma_semaphore, #tpu.memory_space<semaphore_mem>> -> memref<1x!tpu.dma_semaphore, #tpu.memory_space<semaphore_mem>>
    %347 = tpu.memref_squeeze %346 : memref<1x!tpu.dma_semaphore, #tpu.memory_space<semaphore_mem>> -> memref<!tpu.dma_semaphore, #tpu.memory_space<semaphore_mem>>
    tpu.wait_dma2 semaphore(%347 : memref<!tpu.dma_semaphore, #tpu.memory_space<semaphore_mem>>) src(%344 : memref<1x32xf32, #tpu.memory_space<any>>) dst(%345 : memref<1x32xf32, #tpu.memory_space<vmem>>)
    %c0_i32_275 = arith.constant 0 : i32
    %c0_i32_276 = arith.constant 0 : i32
    %348 = tpu.memref_slice %arg2[%216, %c0_i32_276] : memref<128x32xf32, #tpu.memory_space<any>> -> memref<1x32xf32, #tpu.memory_space<any>>
    %c30_i32_277 = arith.constant 30 : i32
    %c0_i32_278 = arith.constant 0 : i32
    %349 = tpu.memref_slice %arg7[%c30_i32_277, %c0_i32_278] : memref<32x32xf32, #tpu.memory_space<vmem>> -> memref<1x32xf32, #tpu.memory_space<vmem>>
    %350 = tpu.memref_slice %arg9[%c0_i32_275] : memref<1x!tpu.dma_semaphore, #tpu.memory_space<semaphore_mem>> -> memref<1x!tpu.dma_semaphore, #tpu.memory_space<semaphore_mem>>
    %351 = tpu.memref_squeeze %350 : memref<1x!tpu.dma_semaphore, #tpu.memory_space<semaphore_mem>> -> memref<!tpu.dma_semaphore, #tpu.memory_space<semaphore_mem>>
    tpu.wait_dma2 semaphore(%351 : memref<!tpu.dma_semaphore, #tpu.memory_space<semaphore_mem>>) src(%348 : memref<1x32xf32, #tpu.memory_space<any>>) dst(%349 : memref<1x32xf32, #tpu.memory_space<vmem>>)
    %c0_i32_279 = arith.constant 0 : i32
    %c0_i32_280 = arith.constant 0 : i32
    %352 = tpu.memref_slice %arg2[%223, %c0_i32_280] : memref<128x32xf32, #tpu.memory_space<any>> -> memref<1x32xf32, #tpu.memory_space<any>>
    %c31_i32_281 = arith.constant 31 : i32
    %c0_i32_282 = arith.constant 0 : i32
    %353 = tpu.memref_slice %arg7[%c31_i32_281, %c0_i32_282] : memref<32x32xf32, #tpu.memory_space<vmem>> -> memref<1x32xf32, #tpu.memory_space<vmem>>
    %354 = tpu.memref_slice %arg9[%c0_i32_279] : memref<1x!tpu.dma_semaphore, #tpu.memory_space<semaphore_mem>> -> memref<1x!tpu.dma_semaphore, #tpu.memory_space<semaphore_mem>>
    %355 = tpu.memref_squeeze %354 : memref<1x!tpu.dma_semaphore, #tpu.memory_space<semaphore_mem>> -> memref<!tpu.dma_semaphore, #tpu.memory_space<semaphore_mem>>
    tpu.wait_dma2 semaphore(%355 : memref<!tpu.dma_semaphore, #tpu.memory_space<semaphore_mem>>) src(%352 : memref<1x32xf32, #tpu.memory_space<any>>) dst(%353 : memref<1x32xf32, #tpu.memory_space<vmem>>)
    %c0_283 = arith.constant 0 : index
    %c0_284 = arith.constant 0 : index
    %356 = vector.load %arg7[%c0_283, %c0_284] : memref<32x32xf32, #tpu.memory_space<vmem>>, vector<32x32xf32>
    %357 = arith.truncf %356 : vector<32x32xf32> to vector<32x32xbf16>
    %c0_285 = arith.constant 0 : index
    %c0_286 = arith.constant 0 : index
    %358 = vector.load %arg3[%c0_285, %c0_286] : memref<32x128xbf16, #tpu.memory_space<vmem>>, vector<32x128xbf16>
    %cst = arith.constant dense<0.000000e+00> : vector<32x128xf32>
    %359 = tpu.matmul %357, %358, %cst {dimension_numbers = #tpu.dot_dimension_numbers<[1], [0], [0], [1], [0, 0, 1, 1], [], []>} : vector<32x32xbf16>, vector<32x128xbf16>, vector<32x128xf32> -> vector<32x128xf32>
    %c0_287 = arith.constant 0 : index
    %c0_288 = arith.constant 0 : index
    %360 = vector.load %arg5[%c0_287, %c0_288] : memref<1x128xf32, #tpu.memory_space<vmem>>, vector<1x128xf32>
    %361 = vector.broadcast %360 : vector<1x128xf32> to vector<32x128xf32>
    %362 = arith.addf %359, %361 : vector<32x128xf32>
    %c0_289 = arith.constant 0 : index
    %c0_290 = arith.constant 0 : index
    %363 = vector.load %arg4[%c0_289, %c0_290] : memref<128x128xbf16, #tpu.memory_space<vmem>>, vector<128x128xbf16>
    %c0_291 = arith.constant 0 : index
    %c0_292 = arith.constant 0 : index
    %364 = vector.load %arg8[%c0_291, %c0_292] : memref<8x128xf32, #tpu.memory_space<vmem>>, vector<8x128xf32>
    %365 = vector.extract_strided_slice %362 {offsets = [0, 0], sizes = [8, 128], strides = [1, 1]} : vector<32x128xf32> to vector<8x128xf32>
    %366 = arith.truncf %364 : vector<8x128xf32> to vector<8x128xbf16>
    %cst_293 = arith.constant dense<0.000000e+00> : vector<8x128xf32>
    %367 = tpu.matmul %366, %363, %cst_293 {dimension_numbers = #tpu.dot_dimension_numbers<[1], [0], [0], [1], [0, 0, 1, 1], [], []>} : vector<8x128xbf16>, vector<128x128xbf16>, vector<8x128xf32> -> vector<8x128xf32>
    %368 = arith.addf %365, %367 : vector<8x128xf32>
    %369 = math.tanh %368 : vector<8x128xf32>
    %370 = vector.extract_strided_slice %362 {offsets = [8, 0], sizes = [8, 128], strides = [1, 1]} : vector<32x128xf32> to vector<8x128xf32>
    %371 = arith.truncf %369 : vector<8x128xf32> to vector<8x128xbf16>
    %cst_294 = arith.constant dense<0.000000e+00> : vector<8x128xf32>
    %372 = tpu.matmul %371, %363, %cst_294 {dimension_numbers = #tpu.dot_dimension_numbers<[1], [0], [0], [1], [0, 0, 1, 1], [], []>} : vector<8x128xbf16>, vector<128x128xbf16>, vector<8x128xf32> -> vector<8x128xf32>
    %373 = arith.addf %370, %372 : vector<8x128xf32>
    %374 = math.tanh %373 : vector<8x128xf32>
    %375 = vector.extract_strided_slice %362 {offsets = [16, 0], sizes = [8, 128], strides = [1, 1]} : vector<32x128xf32> to vector<8x128xf32>
    %376 = arith.truncf %374 : vector<8x128xf32> to vector<8x128xbf16>
    %cst_295 = arith.constant dense<0.000000e+00> : vector<8x128xf32>
    %377 = tpu.matmul %376, %363, %cst_295 {dimension_numbers = #tpu.dot_dimension_numbers<[1], [0], [0], [1], [0, 0, 1, 1], [], []>} : vector<8x128xbf16>, vector<128x128xbf16>, vector<8x128xf32> -> vector<8x128xf32>
    %378 = arith.addf %375, %377 : vector<8x128xf32>
    %379 = math.tanh %378 : vector<8x128xf32>
    %380 = vector.extract_strided_slice %362 {offsets = [24, 0], sizes = [8, 128], strides = [1, 1]} : vector<32x128xf32> to vector<8x128xf32>
    %381 = arith.truncf %379 : vector<8x128xf32> to vector<8x128xbf16>
    %cst_296 = arith.constant dense<0.000000e+00> : vector<8x128xf32>
    %382 = tpu.matmul %381, %363, %cst_296 {dimension_numbers = #tpu.dot_dimension_numbers<[1], [0], [0], [1], [0, 0, 1, 1], [], []>} : vector<8x128xbf16>, vector<128x128xbf16>, vector<8x128xf32> -> vector<8x128xf32>
    %383 = arith.addf %380, %382 : vector<8x128xf32>
    %384 = math.tanh %383 : vector<8x128xf32>
    %c0_297 = arith.constant 0 : index
    %c0_298 = arith.constant 0 : index
    %385 = vector.load %arg8[%c0_297, %c0_298] : memref<8x128xf32, #tpu.memory_space<vmem>>, vector<8x128xf32>
    tpu.vector_store %arg8[%c0_297, %c0_298], %384 {strides = array<i32>} : memref<8x128xf32, #tpu.memory_space<vmem>>, vector<8x128xf32>,
    %c1_i32_299 = arith.constant 1 : i32
    %386 = arith.cmpi eq, %arg0, %c1_i32_299 : i32
    %387 = arith.extui %386 : i1 to i32
    %c0_i32_300 = arith.constant 0 : i32
    %388 = arith.cmpi ne, %387, %c0_i32_300 : i32
    scf.if %388 {
      %c0_301 = arith.constant 0 : index
      %c0_302 = arith.constant 0 : index
      %389 = vector.load %arg6[%c0_301, %c0_302] : memref<8x128xf32, #tpu.memory_space<vmem>>, vector<8x128xf32>
      tpu.vector_store %arg6[%c0_301, %c0_302], %384 {strides = array<i32>} : memref<8x128xf32, #tpu.memory_space<vmem>>, vector<8x128xf32>,
    } else {
    }
    return
  }
  func.func @transform_1(%arg0: i32, %arg1: memref<8x8xi32, #tpu.memory_space<smem>>) -> (i32, i32) {
    %c0_i32 = arith.constant 0 : i32
    %c0_i32_0 = arith.constant 0 : i32
    %c0_i32_1 = arith.constant 0 : i32
    return %c0_i32, %c0_i32_0 : i32, i32
  }
  func.func @transform_2(%arg0: i32, %arg1: memref<8x8xi32, #tpu.memory_space<smem>>) -> (i32, i32) {
    %c0_i32 = arith.constant 0 : i32
    %c0_i32_0 = arith.constant 0 : i32
    %c0_i32_1 = arith.constant 0 : i32
    return %c0_i32, %c0_i32_0 : i32, i32
  }
  func.func @transform_3(%arg0: i32, %arg1: memref<8x8xi32, #tpu.memory_space<smem>>) -> (i32, i32) {
    %c0_i32 = arith.constant 0 : i32
    %c0_i32_0 = arith.constant 0 : i32
    %c0_i32_1 = arith.constant 0 : i32
    return %c0_i32, %c0_i32_0 : i32, i32
  }
  func.func @transform_4(%arg0: i32, %arg1: memref<8x8xi32, #tpu.memory_space<smem>>) -> (i32, i32) {
    %c0_i32 = arith.constant 0 : i32
    %c0_i32_0 = arith.constant 0 : i32
    %c0_i32_1 = arith.constant 0 : i32
    return %c0_i32, %c0_i32_0 : i32, i32
  }
}

</mosaic_0001>

<bundles_post_ra>
// kernel: tpu_custom_call.1
= control target key start
LH: loop header
LB: loop body
LE: loop exit
PB: predicated region body
PF: predicated region fallthrough
CT: control target
= control target key end

     0   :  { %s1985_s21 = smov [#allocation6]   ;;  %s2215_s0 = inlined_call_operand.vmem [shape: s32[8,8], index: 0, kind: input, shape index: {}]   ;;  %s2216_s1 = inlined_call_operand.vmem [shape: f32[128,32], index: 1, kind: input, shape index: {}]   ;;  %s2217_s2 = inlined_call_operand.vmem [shape: bf16[32,128], index: 2, kind: input, shape index: {}]   ;;  %s2218_s3 = inlined_call_operand.vmem [shape: bf16[128,128], index: 3, kind: input, shape index: {}]   ;;  %s2219_s4 = inlined_call_operand.vmem [shape: f32[1,128], index: 4, kind: input, shape index: {}]   ;;  %s2220_s5 = inlined_call_operand.hbm [shape: f32[8,128], index: 5, kind: output, shape index: {}]  }
   0x1   :  { %s11_s20 = sshll.u32 %s2215_s0, 4  ;;  %s12_s20 = int_to_ptr.vmem [resolvable:$true] %s11_s20 }
   0x2   :  { %14 = dma.vmem_to_smem %s12_s20, 128, %s1985_s21, [#allocation5] }
   0x3   :  { %1973 = dma.done.wait [#allocation5], 128 }
   0x4   :  { %1974 = vsyncadd [#allocation5], 4294967168 }
   0x5   :  { %17 = sfence }
   0x6   :  { %18 = vsyncpa [#allocation8], 0  ;;  %s2021_s22 = smov 0  }
   0x7 LB: > { %s2027_s23 = sadd.s32 4294967295, %s1983_s22   ;;  %p1828_p0 = scmp.ge.s32.totalorder %s1983_s22, 1  ;;  %s1983_s22 = sphi %s2021_s22, %s24_s22  }
   0x8   : > { %p133_p1 = scmp.lt.s32.totalorder %s1983_s22, 3 }
   0xa   : > { %p134_p2 = pnand %p1828_p0, %p133_p1 }
   0xb   : > { %p1830_p3 = scmp.ne.s32.totalorder (!%p134_p2), %s2027_s23, 0 }
   0xc   : > { %137 = sbr.rel (%p134_p2) target bundleno = 943 (0x3af), region = 32 }
  0x11   : > { %152 = sbr.rel (%p1830_p3) target bundleno = 24 (0x18), region = 36 }
  0x16   : > { %v1986_v0 = vmov 0.0  }
  0x17   : > { %153 = vst [vmem:[#allocation3] sm:$0xff] %v1986_v0 }
  0x18 PF: > { %s2033_s0 = sshll.u32 %s2027_s23, 9 }
  0x19   : > { %s155_s24 = sld [smem:[#allocation6 + %s2033_s0]] }
  0x1f   : > { %s156_s27 = scalar_lea.vmem %s2216_s1, %s155_s24 }
  0x20   : > { %v171_v1 = vld [vmem:[%s156_s27] sm:$0x1] }
  0x21   : > { %172 = vst [vmem:[#allocation2] sm:$0x1] %v171_v1 }
  0x22   : > { %190 = vsyncadd [#allocation4], 16  ;;  %s191_s28 = sadd.s32 1, %s2033_s0 }
  0x23   : > { %s192_s29 = sld [smem:[#allocation6 + %s191_s28]] }
  0x29   : > { %s193_s7 = scalar_lea.vmem %s2216_s1, %s192_s29 }
  0x2a   : > { %v209_v2 = vld [vmem:[%s193_s7] sm:$0x1] }
  0x2b   : > { %210 = vst [vmem:[#allocation2 + $0x1] sm:$0x1] %v209_v2 }
  0x2c   : > { %228 = vsyncadd [#allocation4], 16  ;;  %s229_s8 = sadd.s32 2, %s2033_s0 }
  0x2d   : > { %s230_s9 = sld [smem:[#allocation6 + %s229_s8]] }
  0x33   : > { %s231_s12 = scalar_lea.vmem %s2216_s1, %s230_s9 }
  0x34   : > { %v247_v3 = vld [vmem:[%s231_s12] sm:$0x1] }
  0x35   : > { %248 = vst [vmem:[#allocation2 + $0x2] sm:$0x1] %v247_v3 }
  0x36   : > { %266 = vsyncadd [#allocation4], 16  ;;  %s267_s13 = sadd.s32 3, %s2033_s0 }
  0x37   : > { %s268_s14 = sld [smem:[#allocation6 + %s267_s13]] }
  0x3d   : > { %s269_s17 = scalar_lea.vmem %s2216_s1, %s268_s14 }
  0x3e   : > { %v285_v4 = vld [vmem:[%s269_s17] sm:$0x1] }
  0x3f   : > { %286 = vst [vmem:[#allocation2 + $0x3] sm:$0x1] %v285_v4 }
  0x40   : > { %304 = vsyncadd [#allocation4], 16  ;;  %s305_s18 = sadd.s32 4, %s2033_s0 }
  0x41   : > { %s306_s19 = sld [smem:[#allocation6 + %s305_s18]] }
  0x47   : > { %s307_s24 = scalar_lea.vmem %s2216_s1, %s306_s19 }
  0x48   : > { %v323_v5 = vld [vmem:[%s307_s24] sm:$0x1] }
  0x49   : > { %324 = vst [vmem:[#allocation2 + $0x4] sm:$0x1] %v323_v5 }
  0x4a   : > { %342 = vsyncadd [#allocation4], 16  ;;  %s343_s25 = sadd.s32 5, %s2033_s0 }
  0x4b   : > { %s344_s26 = sld [smem:[#allocation6 + %s343_s25]] }
  0x51   : > { %s345_s29 = scalar_lea.vmem %s2216_s1, %s344_s26 }
  0x52   : > { %v361_v6 = vld [vmem:[%s345_s29] sm:$0x1] }
  0x53   : > { %362 = vst [vmem:[#allocation2 + $0x5] sm:$0x1] %v361_v6 }
  0x54   : > { %380 = vsyncadd [#allocation4], 16  ;;  %s381_s30 = sadd.s32 6, %s2033_s0 }
  0x55   : > { %s382_s6 = sld [smem:[#allocation6 + %s381_s30]] }
  0x5b   : > { %s383_s9 = scalar_lea.vmem %s2216_s1, %s382_s6 }
  0x5c   : > { %v399_v7 = vld [vmem:[%s383_s9] sm:$0x1] }
  0x5d   : > { %400 = vst [vmem:[#allocation2 + $0x6] sm:$0x1] %v399_v7 }
  0x5e   : > { %418 = vsyncadd [#allocation4], 16  ;;  %s419_s10 = sadd.s32 7, %s2033_s0 }
  0x5f   : > { %s420_s11 = sld [smem:[#allocation6 + %s419_s10]] }
  0x65   : > { %s421_s14 = scalar_lea.vmem %s2216_s1, %s420_s11 }
  0x66   : > { %v437_v8 = vld [vmem:[%s421_s14] sm:$0x1] }
  0x67   : > { %438 = vst [vmem:[#allocation2 + $0x7] sm:$0x1] %v437_v8 }
  0x68   : > { %456 = vsyncadd [#allocation4], 16  ;;  %s2068_s15 = sadd.s32 128, %s2033_s0 }
  0x69   : > { %s459_s16 = sld [smem:[#allocation6 + %s2068_s15]] }
  0x6f   : > { %s460_s19 = scalar_lea.vmem %s2216_s1, %s459_s16 }
  0x70   : > { %v476_v9 = vld [vmem:[%s460_s19] sm:$0x1] }
  0x71   : > { %477 = vst [vmem:[#allocation2 + $0x8] sm:$0x1] %v476_v9 }
  0x72   : > { %495 = vsyncadd [#allocation4], 16  ;;  %s496_s20 = sadd.s32 1, %s2068_s15 }
  0x73   : > { %s497_s21 = sld [smem:[#allocation6 + %s496_s20]] }
  0x79   : > { %s498_s26 = scalar_lea.vmem %s2216_s1, %s497_s21 }
  0x7a   : > { %v514_v10 = vld [vmem:[%s498_s26] sm:$0x1] }
  0x7b   : > { %515 = vst [vmem:[#allocation2 + $0x9] sm:$0x1] %v514_v10 }
  0x7c   : > { %533 = vsyncadd [#allocation4], 16  ;;  %s534_s27 = sadd.s32 2, %s2068_s15 }
  0x7d   : > { %s535_s28 = sld [smem:[#allocation6 + %s534_s27]] }
  0x83   : > { %s536_s6 = scalar_lea.vmem %s2216_s1, %s535_s28 }
  0x84   : > { %v552_v11 = vld [vmem:[%s536_s6] sm:$0x1] }
  0x85   : > { %553 = vst [vmem:[#allocation2 + $0xa] sm:$0x1] %v552_v11 }
  0x86   : > { %571 = vsyncadd [#allocation4], 16  ;;  %s572_s7 = sadd.s32 3, %s2068_s15 }
  0x87   : > { %s573_s8 = sld [smem:[#allocation6 + %s572_s7]] }
  0x8d   : > { %s574_s11 = scalar_lea.vmem %s2216_s1, %s573_s8 }
  0x8e   : > { %v590_v12 = vld [vmem:[%s574_s11] sm:$0x1] }
  0x8f   : > { %591 = vst [vmem:[#allocation2 + $0xb] sm:$0x1] %v590_v12 }
  0x90   : > { %609 = vsyncadd [#allocation4], 16  ;;  %s610_s12 = sadd.s32 4, %s2068_s15 }
  0x91   : > { %s611_s13 = sld [smem:[#allocation6 + %s610_s12]] }
  0x97   : > { %s612_s17 = scalar_lea.vmem %s2216_s1, %s611_s13 }
  0x98   : > { %v628_v13 = vld [vmem:[%s612_s17] sm:$0x1] }
  0x99   : > { %629 = vst [vmem:[#allocation2 + $0xc] sm:$0x1] %v628_v13 }
  0x9a   : > { %647 = vsyncadd [#allocation4], 16  ;;  %s648_s18 = sadd.s32 5, %s2068_s15 }
  0x9b   : > { %s649_s19 = sld [smem:[#allocation6 + %s648_s18]] }
  0xa1   : > { %s650_s24 = scalar_lea.vmem %s2216_s1, %s649_s19 }
  0xa2   : > { %v666_v14 = vld [vmem:[%s650_s24] sm:$0x1] }
  0xa3   : > { %667 = vst [vmem:[#allocation2 + $0xd] sm:$0x1] %v666_v14 }
  0xa4   : > { %685 = vsyncadd [#allocation4], 16  ;;  %s686_s25 = sadd.s32 6, %s2068_s15 }
  0xa5   : > { %s687_s26 = sld [smem:[#allocation6 + %s686_s25]] }
  0xab   : > { %s688_s29 = scalar_lea.vmem %s2216_s1, %s687_s26 }
  0xac   : > { %v704_v15 = vld [vmem:[%s688_s29] sm:$0x1] }
  0xad   : > { %705 = vst [vmem:[#allocation2 + $0xe] sm:$0x1] %v704_v15 }
  0xae   : > { %723 = vsyncadd [#allocation4], 16  ;;  %s724_s30 = sadd.s32 7, %s2068_s15 }
  0xaf   : > { %s725_s6 = sld [smem:[#allocation6 + %s724_s30]] }
  0xb5   : > { %s726_s9 = scalar_lea.vmem %s2216_s1, %s725_s6 }
  0xb6   : > { %v742_v16 = vld [vmem:[%s726_s9] sm:$0x1] }
  0xb7   : > { %743 = vst [vmem:[#allocation2 + $0xf] sm:$0x1] %v742_v16 }
  0xb8   : > { %761 = vsyncadd [#allocation4], 16  ;;  %s2103_s10 = sadd.s32 256, %s2033_s0 }
  0xb9   : > { %s764_s11 = sld [smem:[#allocation6 + %s2103_s10]] }
  0xbf   : > { %s765_s14 = scalar_lea.vmem %s2216_s1, %s764_s11 }
  0xc0   : > { %v781_v17 = vld [vmem:[%s765_s14] sm:$0x1] }
  0xc1   : > { %782 = vst [vmem:[#allocation2 + $0x10] sm:$0x1] %v781_v17 }
  0xc2   : > { %800 = vsyncadd [#allocation4], 16  ;;  %s801_s15 = sadd.s32 1, %s2103_s10 }
  0xc3   : > { %s802_s16 = sld [smem:[#allocation6 + %s801_s15]] }
  0xc9   : > { %s803_s19 = scalar_lea.vmem %s2216_s1, %s802_s16 }
  0xca   : > { %v819_v18 = vld [vmem:[%s803_s19] sm:$0x1] }
  0xcb   : > { %820 = vst [vmem:[#allocation2 + $0x11] sm:$0x1] %v819_v18 }
  0xcc   : > { %838 = vsyncadd [#allocation4], 16  ;;  %s839_s20 = sadd.s32 2, %s2103_s10 }
  0xcd   : > { %s840_s21 = sld [smem:[#allocation6 + %s839_s20]] }
  0xd3   : > { %s841_s26 = scalar_lea.vmem %s2216_s1, %s840_s21 }
  0xd4   : > { %v857_v19 = vld [vmem:[%s841_s26] sm:$0x1] }
  0xd5   : > { %858 = vst [vmem:[#allocation2 + $0x12] sm:$0x1] %v857_v19 }
  0xd6   : > { %876 = vsyncadd [#allocation4], 16  ;;  %s877_s27 = sadd.s32 3, %s2103_s10 }
  0xd7   : > { %s878_s28 = sld [smem:[#allocation6 + %s877_s27]] }
  0xdd   : > { %s879_s6 = scalar_lea.vmem %s2216_s1, %s878_s28 }
  0xde   : > { %v895_v20 = vld [vmem:[%s879_s6] sm:$0x1] }
  0xdf   : > { %896 = vst [vmem:[#allocation2 + $0x13] sm:$0x1] %v895_v20 }
  0xe0   : > { %914 = vsyncadd [#allocation4], 16  ;;  %s915_s7 = sadd.s32 4, %s2103_s10 }
  0xe1   : > { %s916_s8 = sld [smem:[#allocation6 + %s915_s7]] }
  0xe7   : > { %s917_s12 = scalar_lea.vmem %s2216_s1, %s916_s8 }
  0xe8   : > { %v933_v21 = vld [vmem:[%s917_s12] sm:$0x1] }
  0xe9   : > { %934 = vst [vmem:[#allocation2 + $0x14] sm:$0x1] %v933_v21 }
  0xea   : > { %952 = vsyncadd [#allocation4], 16  ;;  %s953_s13 = sadd.s32 5, %s2103_s10 }
  0xeb   : > { %s954_s14 = sld [smem:[#allocation6 + %s953_s13]] }
  0xf1   : > { %s955_s17 = scalar_lea.vmem %s2216_s1, %s954_s14 }
  0xf2   : > { %v971_v22 = vld [vmem:[%s955_s17] sm:$0x1] }
  0xf3   : > { %972 = vst [vmem:[#allocation2 + $0x15] sm:$0x1] %v971_v22 }
  0xf4   : > { %990 = vsyncadd [#allocation4], 16  ;;  %s991_s18 = sadd.s32 6, %s2103_s10 }
  0xf5   : > { %s992_s19 = sld [smem:[#allocation6 + %s991_s18]] }
  0xfb   : > { %s993_s24 = scalar_lea.vmem %s2216_s1, %s992_s19 }
  0xfc   : > { %v1009_v23 = vld [vmem:[%s993_s24] sm:$0x1] }
  0xfd   : > { %1010 = vst [vmem:[#allocation2 + $0x16] sm:$0x1] %v1009_v23 }
  0xfe   : > { %1028 = vsyncadd [#allocation4], 16  ;;  %s1029_s25 = sadd.s32 7, %s2103_s10 }
  0xff   : > { %s1030_s26 = sld [smem:[#allocation6 + %s1029_s25]] }
 0x105   : > { %s1031_s29 = scalar_lea.vmem %s2216_s1, %s1030_s26 }
 0x106   : > { %v1047_v24 = vld [vmem:[%s1031_s29] sm:$0x1] }
 0x107   : > { %1048 = vst [vmem:[#allocation2 + $0x17] sm:$0x1] %v1047_v24 }
 0x108   : > { %1066 = vsyncadd [#allocation4], 16  ;;  %s2138_s30 = sadd.s32 384, %s2033_s0 }
 0x109   : > { %s1069_s6 = sld [smem:[#allocation6 + %s2138_s30]] }
 0x10f   : > { %s1070_s9 = scalar_lea.vmem %s2216_s1, %s1069_s6 }
 0x110   : > { %v1086_v25 = vld [vmem:[%s1070_s9] sm:$0x1] }
 0x111   : > { %1087 = vst [vmem:[#allocation2 + $0x18] sm:$0x1] %v1086_v25 }
 0x112   : > { %1105 = vsyncadd [#allocation4], 16  ;;  %s1106_s10 = sadd.s32 1, %s2138_s30 }
 0x113   : > { %s1107_s11 = sld [smem:[#allocation6 + %s1106_s10]] }
 0x119   : > { %s1108_s14 = scalar_lea.vmem %s2216_s1, %s1107_s11 }
 0x11a   : > { %v1124_v26 = vld [vmem:[%s1108_s14] sm:$0x1] }
 0x11b   : > { %1125 = vst [vmem:[#allocation2 + $0x19] sm:$0x1] %v1124_v26 }
 0x11c   : > { %1143 = vsyncadd [#allocation4], 16  ;;  %s1144_s0 = sadd.s32 2, %s2138_s30 }
 0x11d   : > { %s1145_s15 = sld [smem:[#allocation6 + %s1144_s0]] }
 0x123   : > { %s1146_s18 = scalar_lea.vmem %s2216_s1, %s1145_s15 }
 0x124   : > { %v1162_v27 = vld [vmem:[%s1146_s18] sm:$0x1] }
 0x125   : > { %1163 = vst [vmem:[#allocation2 + $0x1a] sm:$0x1] %v1162_v27 }
 0x126   : > { %1181 = vsyncadd [#allocation4], 16  ;;  %s1182_s19 = sadd.s32 3, %s2138_s30 }
 0x127   : > { %s1183_s20 = sld [smem:[#allocation6 + %s1182_s19]] }
 0x12d   : > { %s1184_s25 = scalar_lea.vmem %s2216_s1, %s1183_s20 }
 0x12e   : > { %v1200_v28 = vld [vmem:[%s1184_s25] sm:$0x1] }
 0x12f   : > { %1201 = vst [vmem:[#allocation2 + $0x1b] sm:$0x1] %v1200_v28 }
 0x130   : > { %1219 = vsyncadd [#allocation4], 16  ;;  %s1220_s26 = sadd.s32 4, %s2138_s30 }
 0x131   : > { %s1221_s27 = sld [smem:[#allocation6 + %s1220_s26]] }
 0x137   : > { %s1222_s6 = scalar_lea.vmem %s2216_s1, %s1221_s27 }
 0x138   : > { %v1238_v29 = vld [vmem:[%s1222_s6] sm:$0x1] }
 0x139   : > { %1239 = vst [vmem:[#allocation2 + $0x1c] sm:$0x1] %v1238_v29 }
 0x13a   : > { %1257 = vsyncadd [#allocation4], 16  ;;  %s1258_s7 = sadd.s32 5, %s2138_s30 }
 0x13b   : > { %s1259_s8 = sld [smem:[#allocation6 + %s1258_s7]] }
 0x141   : > { %s1260_s11 = scalar_lea.vmem %s2216_s1, %s1259_s8 }
 0x142   : > { %v1276_v30 = vld [vmem:[%s1260_s11] sm:$0x1] }
 0x143   : > { %1277 = vst [vmem:[#allocation2 + $0x1d] sm:$0x1] %v1276_v30 }
 0x144   : > { %1295 = vsyncadd [#allocation4], 16  ;;  %s1296_s12 = sadd.s32 6, %s2138_s30 }
 0x145   : > { %s1297_s13 = sld [smem:[#allocation6 + %s1296_s12]] }
 0x14b   : > { %s1298_s15 = scalar_lea.vmem %s2216_s1, %s1297_s13 }
 0x14c   : > { %v1314_v31 = vld [vmem:[%s1298_s15] sm:$0x1] }
 0x14d   : > { %1315 = vst [vmem:[#allocation2 + $0x1e] sm:$0x1] %v1314_v31 }
 0x14e   : > { %1333 = vsyncadd [#allocation4], 16  ;;  %s1334_s16 = sadd.s32 7, %s2138_s30 }
 0x14f   : > { %s1335_s17 = sld [smem:[#allocation6 + %s1334_s16]] }
 0x155   : > { %s1336_s20 = scalar_lea.vmem %s2216_s1, %s1335_s17 }
 0x156   : > { %v1352_v32 = vld [vmem:[%s1336_s20] sm:$0x1] }
 0x157   : > { %1353 = vst [vmem:[#allocation2 + $0x1f] sm:$0x1] %v1352_v32 }
 0x158   : > { %1371 = vsyncadd [#allocation4], 16 }
 0x159   : > { %1975 = dma.done.wait [#allocation4], 512 }
 0x15a   : > { %1976 = vsyncadd [#allocation4], 4294966784  ;;  %v1899_v33 = vld [vmem:[%s2218_s3 + $0x38] sm:$0xff]  ;;  %v1891_v34 = vld [vmem:[%s2217_s2 + $0x8] sm:$0xff]  ;;  %vm1463_vm0 = vcmask 261120   ;;  %p1877_p4 = scmp.ne.s32.totalorder %s2027_s23, 1 }
 0x15b   : > { %1555 = vmatpush.bf16.msra.mxu1 %v1899_v33  ;;  %v1898_v35 = vld [vmem:[%s2218_s3 + $0x30] sm:$0xff]  ;;  %1571 = vmatpush.bf16.msra.mxu2 %v1899_v33  ;;  %v1890_v36 = vld [vmem:[%s2217_s2] sm:$0xff]  ;;  %v1438_v38 = vld [vmem:[#allocation2 + $0x8] sm:$0xff] }
 0x15c   : > { %1476 = vmatpush.bf16.msra.mxu0 %v1891_v34  ;;  %v1437_v37 = vld [vmem:[#allocation2] sm:$0xff]  ;;  %1587 = vmatpush.bf16.msra.mxu3 %v1899_v33  ;;  %v1897_v39 = vld [vmem:[%s2218_s3 + $0x28] sm:$0xff]  ;;  %v1895_v42 = vld [vmem:[%s2218_s3 + $0x18] sm:$0xff] }
 0x15d   : > { %v1441_v40 = vpack.c.bf16 %v1438_v38, %v1437_v37  ;;  %v1896_v41 = vld [vmem:[%s2218_s3 + $0x20] sm:$0xff]  ;;  %v1894_v43 = vld [vmem:[%s2218_s3 + $0x10] sm:$0xff]  ;;  %v1893_v44 = vld [vmem:[%s2218_s3 + $0x8] sm:$0xff] }
 0x15e   : > { %v1892_v45 = vld [vmem:[%s2218_s3] sm:$0xff]  ;;  %v1439_v56 = vld [vmem:[#allocation2 + $0x10] sm:$0xff]  ;;  %v1440_v57 = vld [vmem:[#allocation2 + $0x18] sm:$0xff] }
 0x15f   : > { %1556 = vmatpush.bf16.msra.mxu1 %v1898_v35  ;;  %1572 = vmatpush.bf16.msra.mxu2 %v1898_v35  ;;  %v1505_v46 = vld [vmem:[#allocation3] sm:$0xff]  ;;  %v1442_v58 = vpack.c.bf16 %v1440_v57, %v1439_v56 }
 0x160   : > { %1477 = vmatpush.bf16.msra.mxu0 %v1890_v36  ;;  %1588 = vmatpush.bf16.msra.mxu3 %v1898_v35  ;;  %v1506_v47 = vpack.c.bf16 %v1505_v46, %v1505_v46  ;;  %v1920_v48 = vld [vmem:[%s2219_s4] ss:$0 sm:$0xff] }
 0x163   : > { %1557 = vmatpush.bf16.msra.mxu1 %v1897_v39  ;;  %1843 = vmatmul.msk.bf16.vlgmr.msra.gmra.mxu0 %vm1463_vm0, %v1441_v40 }
 0x164   : > { %1603 = vmatpush.bf16.msrb.mxu0 %v1899_v33  ;;  %1573 = vmatpush.bf16.msra.mxu2 %v1897_v39 }
 0x165   : > { %1589 = vmatpush.bf16.msra.mxu3 %v1897_v39 }
 0x167   : > { %1558 = vmatpush.bf16.msra.mxu1 %v1896_v41 }
 0x168   : > { %1604 = vmatpush.bf16.msrb.mxu0 %v1898_v35  ;;  %1574 = vmatpush.bf16.msra.mxu2 %v1896_v41 }
 0x169   : > { %1590 = vmatpush.bf16.msra.mxu3 %v1896_v41 }
 0x16b   : > { %1559 = vmatpush.bf16.msra.mxu1 %v1895_v42 }
 0x16c   : > { %1605 = vmatpush.bf16.msrb.mxu0 %v1897_v39  ;;  %1575 = vmatpush.bf16.msra.mxu2 %v1895_v42 }
 0x16d   : > { %1591 = vmatpush.bf16.msra.mxu3 %v1895_v42 }
 0x16f   : > { %1560 = vmatpush.bf16.msra.mxu1 %v1894_v43 }
 0x170   : > { %1606 = vmatpush.bf16.msrb.mxu0 %v1896_v41  ;;  %1576 = vmatpush.bf16.msra.mxu2 %v1894_v43 }
 0x171   : > { %1592 = vmatpush.bf16.msra.mxu3 %v1894_v43 }
 0x173   : > { %1561 = vmatpush.bf16.msra.mxu1 %v1893_v44  ;;  %1844 = vmatmul.msk.bf16.gmra.mxu0 %vm1463_vm0, %v1442_v58 }
 0x174   : > { %1607 = vmatpush.bf16.msrb.mxu0 %v1895_v42  ;;  %1577 = vmatpush.bf16.msra.mxu2 %v1893_v44 }
 0x175   : > { %1593 = vmatpush.bf16.msra.mxu3 %v1893_v44 }
 0x177   : > { %1562 = vmatpush.bf16.msra.mxu1 %v1892_v45 }
 0x178   : > { %1608 = vmatpush.bf16.msrb.mxu0 %v1894_v43  ;;  %1578 = vmatpush.bf16.msra.mxu2 %v1892_v45 }
 0x179   : > { %1594 = vmatpush.bf16.msra.mxu3 %v1892_v45 }
 0x17a   : > { %1563 = vmatmul.bf16.vlgmr.msra.gmra.mxu1 %v1506_v47 }
 0x17c   : > { %1609 = vmatpush.bf16.msrb.mxu0 %v1893_v44 }
 0x180   : > { %1610 = vmatpush.bf16.msrb.mxu0 %v1892_v45 }
 0x1e0   : > { %v1479_v49 = vpop.f32.mrf.mxu0 }
 0x1e1   : > { %v1480_v50 = vadd.f32 %v1920_v48, %v1479_v49 }
 0x1e8   : > { %v1481_v59 = vpop.f32.mrf.mxu0 }
 0x1e9   : > { %v1482_v60 = vadd.f32 %v1920_v48, %v1481_v59 }
 0x1f0   : > { %v1484_v2 = vpop.f32.mrf.mxu0 }
 0x1f1   : > { %v1485_v3 = vadd.f32 %v1920_v48, %v1484_v2 }
 0x1f7   : > { %v1564_v51 = vpop.f32.mrf.mxu1 }
 0x1f8   : > { %v1568_v52 = vadd.f32 %v1564_v51, %v1480_v50  ;;  %v1486_v9 = vpop.f32.mrf.mxu0 }
 0x1f9   : > { %v1487_v10 = vadd.f32 %v1920_v48, %v1486_v9 }
 0x1fa   : > { %1921 = vtanh.f32 %v1568_v52 }
 0x1ff   : > { %v1566_v53 = vpop.f32.mrf.mxu1 }
 0x200   : > { %v1922_v54 = vpop.eup %1921 }
 0x201   : > { %v1570_v55 = vpack.c.bf16 %v1922_v54, %v1922_v54 }
 0x203   : > { %1579 = vmatmul.bf16.vlgmr.msra.gmra.mxu2 %v1570_v55 }
 0x286   : > { %v1580_v61 = vpop.f32.mrf.mxu2 }
 0x287   : > { %v1584_v62 = vadd.f32 %v1580_v61, %v1482_v60 }
 0x289   : > { %1923 = vtanh.f32 %v1584_v62 }
 0x28e   : > { %v1582_v63 = vpop.f32.mrf.mxu2 }
 0x28f   : > { %v1924_v0 = vpop.eup %1923 }
 0x290   : > { %v1586_v1 = vpack.c.bf16 %v1924_v0, %v1924_v0 }
 0x292   : > { %1595 = vmatmul.bf16.vlgmr.msra.gmra.mxu3 %v1586_v1 }
 0x315   : > { %v1596_v4 = vpop.f32.mrf.mxu3 }
 0x316   : > { %v1600_v5 = vadd.f32 %v1596_v4, %v1485_v3 }
 0x318   : > { %1925 = vtanh.f32 %v1600_v5 }
 0x31d   : > { %v1598_v6 = vpop.f32.mrf.mxu3 }
 0x31e   : > { %v1926_v7 = vpop.eup %1925 }
 0x31f   : > { %v1602_v8 = vpack.c.bf16 %v1926_v7, %v1926_v7 }
 0x321   : > { %1611 = vmatmul.bf16.vlgmr.msrb.gmra.mxu0 %v1602_v8 }
 0x39e   : > { %v1612_v11 = vpop.f32.mrf.mxu0 }
 0x39f   : > { %v1616_v12 = vadd.f32 %v1612_v11, %v1487_v10 }
 0x3a1   : > { %1927 = vtanh.f32 %v1616_v12 }
 0x3a4   : > { %1622 = sbr.rel (%p1877_p4) target bundleno = 938 (0x3aa), region = 1000 }
 0x3a6   : > { %v1614_v13 = vpop.f32.mrf.mxu0 }
 0x3a7   : > { %v1928_v14 = vpop.eup %1927 }
 0x3a8   : > { %1618 = vst [vmem:[#allocation3] sm:$0xff] %v1928_v14 }
 0x3a9   : > { %1623 = vst [vmem:[#allocation7] sm:$0xff] %v1928_v14 }
 0x3aa PF: > { %p1907_p5 = scmp.eq.s32.totalorder %s2027_s23, 1  ;;  %s1987_s19 = smov [#allocation7]  }
 0x3ab   : > { %s1630_s20 = sshll.u32 %s1987_s19, 4  ;;  %s1632_s25 = sshll.u32 %s2220_s5, 4  ;;  %s1631_s20 = int_to_ptr.vmem [resolvable:$true] %s1630_s20  ;;  %s1633_s25 = int_to_ptr.hbm [resolvable:$true] %s1632_s25 }
 0x3ac   : > { %1904 = dma.vmem_to_hbm [thread:$0]  (%p1907_p5), %s1631_s20, 128, %s1633_s25, [#allocation8]  }
 0x3ad   : > { %1978 = dma.done.wait (%p1907_p5), [#allocation8], 128  }
 0x3ae   : > { %1980 = vsyncadd (%p1907_p5), [#allocation8], 4294967168 }
 0x3af PF: > { %s24_s22 = sadd.s32 1, %s1983_s22  }
 0x3b0   : > { %p21_p6 = scmp.ge.s32.totalorder %s24_s22, 4  }
 0x3b2   :  { %23 = sbr.rel (!%p21_p6) target bundleno = 7 (0x7), region = 1215 }
 0x3b7   :  { %1646 = vsyncpa [#allocation8], 1 }
 0x3b8   :  { %1648 = vsyncpa [#allocation8 + $0x1], 1 }
 0x3b9   :  { %1649 = vsyncmov [#allocation4] }
 0x3bc   :  { %s1650_s23 = vpop.sfrf %1649 }
 0x3bd   :  { %p1882_p7 = scmp.ne.s32.totalorder %s1650_s23, 0 }
 0x3bf   :  { %1654 = shalt.err (%p1882_p7)  }

</bundles_post_ra>
